<compile_context>
chip_gen: v5e
topology: v5e:2x2
jax: 0.10.0
libtpu: 0.0.40
codegen_flags: <defaults>
</compile_context>

<pallas_src>
import functools

import jax
import jax.numpy as jnp
import numpy as np
from jax.experimental import pallas as pl
from jax.experimental.pallas import tpu as pltpu

IN_CH = 63
C1, K1, STRIDE1, PAD1 = 10, 5, 3, 2
C2, K2, STRIDE2, PAD2 = 32, 5, 3, 2
HIDDEN = 32   # small stand-in for the module's default hidden_size=256; the
              # kernel itself is parameterized on H (read from weight shapes).
P1F = IN_CH * K1   # 315 — conv1 im2col feature width


def conv_out_len(L, k, s, p):
    return (L + 2 * p - k) // s + 1


def _eeg_kernel(p1e_ref, mask_ref, w1f_ref, b1_ref, w2t_ref, b2_ref,
                wihf_ref, whhf_ref, bf_ref, wihb_ref, whhb_ref, bb_ref,
                wfcf_ref, wfcb_ref, bfc_ref, h0_ref, c0_ref,
                out_ref, gin_ref, *, L2, TB, H):
    dot = lambda a, b: jnp.dot(a, b, preferred_element_type=jnp.float32)

    # ---- conv1 (im2col matmul) + ReLU + conv2 (tap-sum dot-accumulate) ----
    w1f = w1f_ref[...]                         # (IN_CH*K1, C1), hoisted
    b1 = b1_ref[...]                           # (1, C1)
    acc2 = jnp.zeros((L2 * TB, C2), jnp.float32)
    for k in range(K2):                        # K2 = 5 static taps
        # conv1 patches already gathered (in the wrapper) at the conv1 output
        # positions t1 = STRIDE2*l2 + k - PAD2 that this conv2 tap consumes.
        xk = p1e_ref[k]                        # (L2*TB, IN_CH*K1)
        h1k = jnp.maximum(dot(xk, w1f) + b1, 0.0) * mask_ref[k]   # (L2*TB, C1)
        acc2 = acc2 + dot(h1k, w2t_ref[k])     # += (L2*TB, C1) @ (C1, C2)
    h2 = jnp.maximum(acc2 + b2_ref[...], 0.0)  # (L2*TB, C2), time-major rows

    # ---- LSTM: input projection hoisted out of the recurrence ----
    gin_ref[...] = dot(h2, wihf_ref[...]) + bf_ref[...]           # (L2*TB, 4H)
    whh_f = whhf_ref[...]                                         # (H, 4H)

    def gate_math(gates, c_prev):              # PyTorch gate order: i, f, g, o
        i = jax.nn.sigmoid(gates[:, 0 * H:1 * H])
        f = jax.nn.sigmoid(gates[:, 1 * H:2 * H])
        g = jnp.tanh(gates[:, 2 * H:3 * H])
        o = jax.nn.sigmoid(gates[:, 3 * H:4 * H])
        c_new = f * c_prev + i * g
        return o * jnp.tanh(c_new), c_new

    def fwd_step(t, carry):
        hf, cf = carry
        gates = gin_ref[pl.ds(t * TB, TB), :] + dot(hf, whh_f)    # (TB, 4H)
        return gate_math(gates, cf)

    hf, cf = jax.lax.fori_loop(0, L2, fwd_step, (h0_ref[0], c0_ref[0]),
                               unroll=True)

    # Backward direction: fc only consumes output[:, -1, :]; the reverse-direction
    # hidden at the last time index is one backward cell step on x_{L2-1} from
    # the initial reverse state.
    x_last = h2[(L2 - 1) * TB:L2 * TB, :]                         # (TB, C2)
    gates_b = (dot(x_last, wihb_ref[...]) + dot(h0_ref[1], whhb_ref[...])
               + bb_ref[...])
    hb, _ = gate_math(gates_b, c0_ref[1])

    # ---- fc + sigmoid (lane concat avoided by splitting wfc fwd/bwd) ----
    logits = dot(hf, wfcf_ref[...]) + dot(hb, wfcb_ref[...]) + bfc_ref[...]
    out_ref[...] = jax.nn.sigmoid(logits)                         # (TB, 1)


def eeg_conv_rnn_forward(x, params, h0, c0, *, batch_tile=None):
    f32 = jnp.float32
    B, cin, T = x.shape
    assert cin == IN_CH
    L1 = conv_out_len(T, K1, STRIDE1, PAD1)
    L2 = conv_out_len(L1, K2, STRIDE2, PAD2)
    H = params["whh_f"].shape[1]
    TB = B if batch_tile is None else batch_tile
    assert B % TB == 0, "batch must be divisible by the batch tile"
    NB = B // TB

    # ---- glue: conv1 im2col patches, pre-gathered at conv2 tap positions ----
    x_pad = jnp.pad(x.astype(f32), ((0, 0), (0, 0), (PAD1, PAD1)))        # (B,63,T+4)
    t1 = STRIDE2 * jnp.arange(L2)[None, :] + jnp.arange(K2)[:, None] - PAD2  # (K2,L2)
    valid = (t1 >= 0) & (t1 < L1)                 # conv2 zero-padding mask
    t1c = jnp.clip(t1, 0, L1 - 1)
    t_src = STRIDE1 * t1c[:, :, None] + jnp.arange(K1)[None, None, :]     # (K2,L2,K1)
    patches = x_pad[:, :, t_src]                                          # (B,63,K2,L2,K1)
    p1e = jnp.transpose(patches, (2, 3, 0, 1, 4)).reshape(K2, L2, B, P1F)
    # split the batch into tiles; within a tile rows are time-major (l2*TB + b)
    p1e = jnp.transpose(p1e.reshape(K2, L2, NB, TB, P1F),
                        (2, 0, 1, 3, 4)).reshape(NB, K2, L2 * TB, P1F)
    mask = jnp.broadcast_to(valid.astype(f32)[None, :, :, None, None],
                            (NB, K2, L2, TB, 1)).reshape(NB, K2, L2 * TB, 1)

    # ---- glue: weight layouts (right-multiplication, lane-dense 4H gates) ----
    w1f = params["w1"].reshape(C1, P1F).T                      # (315, C1)
    b1r = params["b1"].reshape(1, C1)
    w2t = jnp.transpose(params["w2"], (2, 1, 0))               # (K2, C1, C2)
    b2r = params["b2"].reshape(1, C2)
    wihf_t = params["wih_f"].T                                 # (C2, 4H)
    whhf_t = params["whh_f"].T                                 # (H, 4H)
    bfr = (params["b_ih_f"] + params["b_hh_f"]).reshape(1, 4 * H)
    wihb_t = params["wih_b"].T
    whhb_t = params["whh_b"].T
    bbr = (params["b_ih_b"] + params["b_hh_b"]).reshape(1, 4 * H)
    wfcf = params["wfc"][:, :H].T                              # (H, 1)
    wfcb = params["wfc"][:, H:].T                              # (H, 1)
    bfcr = params["bfc"].reshape(1, 1)
    h0t = jnp.transpose(h0.reshape(2, NB, TB, H), (1, 0, 2, 3))   # (NB, 2, TB, H)
    c0t = jnp.transpose(c0.reshape(2, NB, TB, H), (1, 0, 2, 3))

    weights = (w1f, b1r, w2t, b2r, wihf_t, whhf_t, bfr,
               wihb_t, whhb_t, bbr, wfcf, wfcb, bfcr)

    def full_spec(a):
        n = a.ndim
        return pl.BlockSpec(a.shape, lambda i, n=n: (0,) * n)

    in_specs = [
        pl.BlockSpec((None, K2, L2 * TB, P1F), lambda i: (i, 0, 0, 0)),
        pl.BlockSpec((None, K2, L2 * TB, 1), lambda i: (i, 0, 0, 0)),
        *[full_spec(w) for w in weights],
        pl.BlockSpec((None, 2, TB, H), lambda i: (i, 0, 0, 0)),
        pl.BlockSpec((None, 2, TB, H), lambda i: (i, 0, 0, 0)),
    ]
    out_spec = pl.BlockSpec((None, TB, 1), lambda i: (i, 0, 0))

    kernel = functools.partial(_eeg_kernel, L2=L2, TB=TB, H=H)
    out = pl.pallas_call(
        kernel,
        out_shape=jax.ShapeDtypeStruct((NB, TB, 1), f32),
        grid_spec=pltpu.PrefetchScalarGridSpec(
            num_scalar_prefetch=0,
            grid=(NB,),
            in_specs=in_specs,
            out_specs=out_spec,
            scratch_shapes=[pltpu.VMEM((L2 * TB, 4 * H), f32)]),
        compiler_params=pltpu.CompilerParams(
            dimension_semantics=("parallel",)),
    )(p1e, mask, *weights, h0t, c0t)
    return out.reshape(B, 1)


def reference_forward(x, p, h0, c0):
    """Plain-JAX reference mirroring the PyTorch module."""
    hp = jax.lax.Precision.HIGHEST
    h = jax.lax.conv_general_dilated(
        x, p["w1"], window_strides=(STRIDE1,), padding=[(PAD1, PAD1)],
        dimension_numbers=("NCH", "OIH", "NCH"), precision=hp)
    h = jnp.maximum(h + p["b1"][None, :, None], 0.0)
    h = jax.lax.conv_general_dilated(
        h, p["w2"], window_strides=(STRIDE2,), padding=[(PAD2, PAD2)],
        dimension_numbers=("NCH", "OIH", "NCH"), precision=hp)
    h = jnp.maximum(h + p["b2"][None, :, None], 0.0)
    seq = jnp.transpose(h, (0, 2, 1))                        # (B, L2, 32)
    L2 = seq.shape[1]

    def cell(x_t, hh, cc, wih, whh, b):
        gates = x_t @ wih.T + hh @ whh.T + b
        i, f, g, o = jnp.split(gates, 4, axis=-1)
        i = jax.nn.sigmoid(i); f = jax.nn.sigmoid(f)
        g = jnp.tanh(g); o = jax.nn.sigmoid(o)
        cc = f * cc + i * g
        hh = o * jnp.tanh(cc)
        return hh, cc

    bf = p["b_ih_f"] + p["b_hh_f"]
    bb = p["b_ih_b"] + p["b_hh_b"]
    hf, cf = h0[0], c0[0]
    for t in range(L2):
        hf, cf = cell(seq[:, t, :], hf, cf, p["wih_f"], p["whh_f"], bf)
    hb, _ = cell(seq[:, L2 - 1, :], h0[1], c0[1], p["wih_b"], p["whh_b"], bb)
    last = jnp.concatenate([hf, hb], axis=-1)
    return jax.nn.sigmoid(last @ p["wfc"].T + p["bfc"])


if __name__ == "__main__":
    key = jax.random.PRNGKey(0)
    B, T, H = 4, 45, HIDDEN
    ks = jax.random.split(key, 17)
    sc = 0.05
    params = {
        "w1": sc * jax.random.normal(ks[0], (C1, IN_CH, K1), jnp.float32),
        "b1": sc * jax.random.normal(ks[1], (C1,), jnp.float32),
        "w2": sc * jax.random.normal(ks[2], (C2, C1, K2), jnp.float32),
        "b2": sc * jax.random.normal(ks[3], (C2,), jnp.float32),
        "wih_f": sc * jax.random.normal(ks[4], (4 * H, C2), jnp.float32),
        "whh_f": sc * jax.random.normal(ks[5], (4 * H, H), jnp.float32),
        "b_ih_f": sc * jax.random.normal(ks[6], (4 * H,), jnp.float32),
        "b_hh_f": sc * jax.random.normal(ks[7], (4 * H,), jnp.float32),
        "wih_b": sc * jax.random.normal(ks[8], (4 * H, C2), jnp.float32),
        "whh_b": sc * jax.random.normal(ks[9], (4 * H, H), jnp.float32),
        "b_ih_b": sc * jax.random.normal(ks[10], (4 * H,), jnp.float32),
        "b_hh_b": sc * jax.random.normal(ks[11], (4 * H,), jnp.float32),
        "wfc": sc * jax.random.normal(ks[12], (1, 2 * H), jnp.float32),
        "bfc": sc * jax.random.normal(ks[13], (1,), jnp.float32),
    }
    x = jax.random.normal(ks[14], (B, IN_CH, T), jnp.float32)
    # init_state analogue is zeros; use small random states to also exercise the
    # nonzero-state path (incl. the backward direction's initial state).
    h0 = 0.1 * jax.random.normal(ks[15], (2, B, H), jnp.float32)
    c0 = 0.1 * jax.random.normal(ks[16], (2, B, H), jnp.float32)

    out = jax.block_until_ready(
        eeg_conv_rnn_forward(x, params, h0, c0, batch_tile=2))   # grid=(2,)
    ref = jax.block_until_ready(reference_forward(x, params, h0, c0))

    assert out.shape == (B, 1), out.shape
    np.testing.assert_allclose(np.asarray(out), np.asarray(ref), atol=1e-3, rtol=0)
    print("KERNEL_OK")
</pallas_src>

<mosaic_0001>
module attributes {stable_mosaic.version = 11 : i64} {
  func.func @_eeg_kernel(%arg0: i32, %arg1: memref<1x5x10x315xf32, #tpu.memory_space<vmem>>, %arg2: memref<1x5x10x1xf32, #tpu.memory_space<vmem>>, %arg3: memref<315x10xf32, #tpu.memory_space<vmem>>, %arg4: memref<1x10xf32, #tpu.memory_space<vmem>>, %arg5: memref<5x10x32xf32, #tpu.memory_space<vmem>>, %arg6: memref<1x32xf32, #tpu.memory_space<vmem>>, %arg7: memref<32x128xf32, #tpu.memory_space<vmem>>, %arg8: memref<32x128xf32, #tpu.memory_space<vmem>>, %arg9: memref<1x128xf32, #tpu.memory_space<vmem>>, %arg10: memref<32x128xf32, #tpu.memory_space<vmem>>, %arg11: memref<32x128xf32, #tpu.memory_space<vmem>>, %arg12: memref<1x128xf32, #tpu.memory_space<vmem>>, %arg13: memref<32x1xf32, #tpu.memory_space<vmem>>, %arg14: memref<32x1xf32, #tpu.memory_space<vmem>>, %arg15: memref<1x1xf32, #tpu.memory_space<vmem>>, %arg16: memref<1x2x2x32xf32, #tpu.memory_space<vmem>>, %arg17: memref<1x2x2x32xf32, #tpu.memory_space<vmem>>, %arg18: memref<1x2x1xf32, #tpu.memory_space<vmem>>, %arg19: memref<10x128xf32, #tpu.memory_space<vmem>>) attributes {dimension_semantics = [#tpu.dimension_semantics<parallel>], iteration_bounds = array<i64: 2>, scalar_prefetch = 0 : i64, scratch_operands = 1 : i64, tpu.core_type = #tpu.core_type<tc>, window_params = [{transform_indices = @transform_0, window_bounds = array<i64: 1, 5, 10, 315>}, {transform_indices = @transform_1, window_bounds = array<i64: 1, 5, 10, 1>}, {pipeline_mode = #tpu.pipeline_mode<synchronous>, transform_indices = @transform_2, window_bounds = array<i64: 315, 10>}, {pipeline_mode = #tpu.pipeline_mode<synchronous>, transform_indices = @transform_3, window_bounds = array<i64: 1, 10>}, {pipeline_mode = #tpu.pipeline_mode<synchronous>, transform_indices = @transform_4, window_bounds = array<i64: 5, 10, 32>}, {pipeline_mode = #tpu.pipeline_mode<synchronous>, transform_indices = @transform_5, window_bounds = array<i64: 1, 32>}, {pipeline_mode = #tpu.pipeline_mode<synchronous>, transform_indices = @transform_6, window_bounds = array<i64: 32, 128>}, {pipeline_mode = #tpu.pipeline_mode<synchronous>, transform_indices = @transform_7, window_bounds = array<i64: 32, 128>}, {pipeline_mode = #tpu.pipeline_mode<synchronous>, transform_indices = @transform_8, window_bounds = array<i64: 1, 128>}, {pipeline_mode = #tpu.pipeline_mode<synchronous>, transform_indices = @transform_9, window_bounds = array<i64: 32, 128>}, {pipeline_mode = #tpu.pipeline_mode<synchronous>, transform_indices = @transform_10, window_bounds = array<i64: 32, 128>}, {pipeline_mode = #tpu.pipeline_mode<synchronous>, transform_indices = @transform_11, window_bounds = array<i64: 1, 128>}, {pipeline_mode = #tpu.pipeline_mode<synchronous>, transform_indices = @transform_12, window_bounds = array<i64: 32, 1>}, {pipeline_mode = #tpu.pipeline_mode<synchronous>, transform_indices = @transform_13, window_bounds = array<i64: 32, 1>}, {pipeline_mode = #tpu.pipeline_mode<synchronous>, transform_indices = @transform_14, window_bounds = array<i64: 1, 1>}, {transform_indices = @transform_15, window_bounds = array<i64: 1, 2, 2, 32>}, {transform_indices = @transform_16, window_bounds = array<i64: 1, 2, 2, 32>}, {transform_indices = @transform_17, window_bounds = array<i64: 1, 2, 1>}]} {
    %c0 = arith.constant 0 : index
    %c0_0 = arith.constant 0 : index
    %0 = vector.load %arg3[%c0, %c0_0] : memref<315x10xf32, #tpu.memory_space<vmem>>, vector<315x10xf32>
    %c0_1 = arith.constant 0 : index
    %c0_2 = arith.constant 0 : index
    %1 = vector.load %arg4[%c0_1, %c0_2] : memref<1x10xf32, #tpu.memory_space<vmem>>, vector<1x10xf32>
    %cst = arith.constant 0.000000e+00 : f32
    %2 = vector.broadcast %cst : f32 to vector<10x32xf32>
    %c0_3 = arith.constant 0 : index
    %c0_4 = arith.constant 0 : index
    %c0_5 = arith.constant 0 : index
    %c0_6 = arith.constant 0 : index
    %3 = vector.load %arg1[%c0_3, %c0_4, %c0_5, %c0_6] : memref<1x5x10x315xf32, #tpu.memory_space<vmem>>, vector<1x1x10x315xf32>
    %4 = vector.shape_cast %3 : vector<1x1x10x315xf32> to vector<10x315xf32>
    %cst_7 = arith.constant dense<0.000000e+00> : vector<10x10xf32>
    %5 = tpu.matmul %4, %0, %cst_7 {dimension_numbers = #tpu.dot_dimension_numbers<[1], [0], [0], [1], [0, 0, 1, 1], [], []>} : vector<10x315xf32>, vector<315x10xf32>, vector<10x10xf32> -> vector<10x10xf32>
    %6 = vector.broadcast %1 : vector<1x10xf32> to vector<10x10xf32>
    %7 = arith.addf %5, %6 : vector<10x10xf32>
    %cst_8 = arith.constant 0.000000e+00 : f32
    %8 = vector.broadcast %cst_8 : f32 to vector<10x10xf32>
    %9 = arith.maximumf %7, %8 : vector<10x10xf32>
    %c0_9 = arith.constant 0 : index
    %c0_10 = arith.constant 0 : index
    %c0_11 = arith.constant 0 : index
    %c0_12 = arith.constant 0 : index
    %10 = vector.load %arg2[%c0_9, %c0_10, %c0_11, %c0_12] : memref<1x5x10x1xf32, #tpu.memory_space<vmem>>, vector<1x1x10x1xf32>
    %11 = vector.shape_cast %10 : vector<1x1x10x1xf32> to vector<10x1xf32>
    %12 = vector.broadcast %11 : vector<10x1xf32> to vector<10x10xf32>
    %13 = arith.mulf %9, %12 : vector<10x10xf32>
    %c0_13 = arith.constant 0 : index
    %c0_14 = arith.constant 0 : index
    %c0_15 = arith.constant 0 : index
    %14 = vector.load %arg5[%c0_13, %c0_14, %c0_15] : memref<5x10x32xf32, #tpu.memory_space<vmem>>, vector<1x10x32xf32>
    %15 = vector.shape_cast %14 : vector<1x10x32xf32> to vector<10x32xf32>
    %cst_16 = arith.constant dense<0.000000e+00> : vector<10x32xf32>
    %16 = tpu.matmul %13, %15, %cst_16 {dimension_numbers = #tpu.dot_dimension_numbers<[1], [0], [0], [1], [0, 0, 1, 1], [], []>} : vector<10x10xf32>, vector<10x32xf32>, vector<10x32xf32> -> vector<10x32xf32>
    %17 = arith.addf %2, %16 : vector<10x32xf32>
    %c0_17 = arith.constant 0 : index
    %c1 = arith.constant 1 : index
    %c0_18 = arith.constant 0 : index
    %c0_19 = arith.constant 0 : index
    %18 = vector.load %arg1[%c0_17, %c1, %c0_18, %c0_19] : memref<1x5x10x315xf32, #tpu.memory_space<vmem>>, vector<1x1x10x315xf32>
    %19 = vector.shape_cast %18 : vector<1x1x10x315xf32> to vector<10x315xf32>
    %cst_20 = arith.constant dense<0.000000e+00> : vector<10x10xf32>
    %20 = tpu.matmul %19, %0, %cst_20 {dimension_numbers = #tpu.dot_dimension_numbers<[1], [0], [0], [1], [0, 0, 1, 1], [], []>} : vector<10x315xf32>, vector<315x10xf32>, vector<10x10xf32> -> vector<10x10xf32>
    %21 = vector.broadcast %1 : vector<1x10xf32> to vector<10x10xf32>
    %22 = arith.addf %20, %21 : vector<10x10xf32>
    %cst_21 = arith.constant 0.000000e+00 : f32
    %23 = vector.broadcast %cst_21 : f32 to vector<10x10xf32>
    %24 = arith.maximumf %22, %23 : vector<10x10xf32>
    %c0_22 = arith.constant 0 : index
    %c1_23 = arith.constant 1 : index
    %c0_24 = arith.constant 0 : index
    %c0_25 = arith.constant 0 : index
    %25 = vector.load %arg2[%c0_22, %c1_23, %c0_24, %c0_25] : memref<1x5x10x1xf32, #tpu.memory_space<vmem>>, vector<1x1x10x1xf32>
    %26 = vector.shape_cast %25 : vector<1x1x10x1xf32> to vector<10x1xf32>
    %27 = vector.broadcast %26 : vector<10x1xf32> to vector<10x10xf32>
    %28 = arith.mulf %24, %27 : vector<10x10xf32>
    %c1_26 = arith.constant 1 : index
    %c0_27 = arith.constant 0 : index
    %c0_28 = arith.constant 0 : index
    %29 = vector.load %arg5[%c1_26, %c0_27, %c0_28] : memref<5x10x32xf32, #tpu.memory_space<vmem>>, vector<1x10x32xf32>
    %30 = vector.shape_cast %29 : vector<1x10x32xf32> to vector<10x32xf32>
    %cst_29 = arith.constant dense<0.000000e+00> : vector<10x32xf32>
    %31 = tpu.matmul %28, %30, %cst_29 {dimension_numbers = #tpu.dot_dimension_numbers<[1], [0], [0], [1], [0, 0, 1, 1], [], []>} : vector<10x10xf32>, vector<10x32xf32>, vector<10x32xf32> -> vector<10x32xf32>
    %32 = arith.addf %17, %31 : vector<10x32xf32>
    %c0_30 = arith.constant 0 : index
    %c2 = arith.constant 2 : index
    %c0_31 = arith.constant 0 : index
    %c0_32 = arith.constant 0 : index
    %33 = vector.load %arg1[%c0_30, %c2, %c0_31, %c0_32] : memref<1x5x10x315xf32, #tpu.memory_space<vmem>>, vector<1x1x10x315xf32>
    %34 = vector.shape_cast %33 : vector<1x1x10x315xf32> to vector<10x315xf32>
    %cst_33 = arith.constant dense<0.000000e+00> : vector<10x10xf32>
    %35 = tpu.matmul %34, %0, %cst_33 {dimension_numbers = #tpu.dot_dimension_numbers<[1], [0], [0], [1], [0, 0, 1, 1], [], []>} : vector<10x315xf32>, vector<315x10xf32>, vector<10x10xf32> -> vector<10x10xf32>
    %36 = vector.broadcast %1 : vector<1x10xf32> to vector<10x10xf32>
    %37 = arith.addf %35, %36 : vector<10x10xf32>
    %cst_34 = arith.constant 0.000000e+00 : f32
    %38 = vector.broadcast %cst_34 : f32 to vector<10x10xf32>
    %39 = arith.maximumf %37, %38 : vector<10x10xf32>
    %c0_35 = arith.constant 0 : index
    %c2_36 = arith.constant 2 : index
    %c0_37 = arith.constant 0 : index
    %c0_38 = arith.constant 0 : index
    %40 = vector.load %arg2[%c0_35, %c2_36, %c0_37, %c0_38] : memref<1x5x10x1xf32, #tpu.memory_space<vmem>>, vector<1x1x10x1xf32>
    %41 = vector.shape_cast %40 : vector<1x1x10x1xf32> to vector<10x1xf32>
    %42 = vector.broadcast %41 : vector<10x1xf32> to vector<10x10xf32>
    %43 = arith.mulf %39, %42 : vector<10x10xf32>
    %c2_39 = arith.constant 2 : index
    %c0_40 = arith.constant 0 : index
    %c0_41 = arith.constant 0 : index
    %44 = vector.load %arg5[%c2_39, %c0_40, %c0_41] : memref<5x10x32xf32, #tpu.memory_space<vmem>>, vector<1x10x32xf32>
    %45 = vector.shape_cast %44 : vector<1x10x32xf32> to vector<10x32xf32>
    %cst_42 = arith.constant dense<0.000000e+00> : vector<10x32xf32>
    %46 = tpu.matmul %43, %45, %cst_42 {dimension_numbers = #tpu.dot_dimension_numbers<[1], [0], [0], [1], [0, 0, 1, 1], [], []>} : vector<10x10xf32>, vector<10x32xf32>, vector<10x32xf32> -> vector<10x32xf32>
    %47 = arith.addf %32, %46 : vector<10x32xf32>
    %c0_43 = arith.constant 0 : index
    %c3 = arith.constant 3 : index
    %c0_44 = arith.constant 0 : index
    %c0_45 = arith.constant 0 : index
    %48 = vector.load %arg1[%c0_43, %c3, %c0_44, %c0_45] : memref<1x5x10x315xf32, #tpu.memory_space<vmem>>, vector<1x1x10x315xf32>
    %49 = vector.shape_cast %48 : vector<1x1x10x315xf32> to vector<10x315xf32>
    %cst_46 = arith.constant dense<0.000000e+00> : vector<10x10xf32>
    %50 = tpu.matmul %49, %0, %cst_46 {dimension_numbers = #tpu.dot_dimension_numbers<[1], [0], [0], [1], [0, 0, 1, 1], [], []>} : vector<10x315xf32>, vector<315x10xf32>, vector<10x10xf32> -> vector<10x10xf32>
    %51 = vector.broadcast %1 : vector<1x10xf32> to vector<10x10xf32>
    %52 = arith.addf %50, %51 : vector<10x10xf32>
    %cst_47 = arith.constant 0.000000e+00 : f32
    %53 = vector.broadcast %cst_47 : f32 to vector<10x10xf32>
    %54 = arith.maximumf %52, %53 : vector<10x10xf32>
    %c0_48 = arith.constant 0 : index
    %c3_49 = arith.constant 3 : index
    %c0_50 = arith.constant 0 : index
    %c0_51 = arith.constant 0 : index
    %55 = vector.load %arg2[%c0_48, %c3_49, %c0_50, %c0_51] : memref<1x5x10x1xf32, #tpu.memory_space<vmem>>, vector<1x1x10x1xf32>
    %56 = vector.shape_cast %55 : vector<1x1x10x1xf32> to vector<10x1xf32>
    %57 = vector.broadcast %56 : vector<10x1xf32> to vector<10x10xf32>
    %58 = arith.mulf %54, %57 : vector<10x10xf32>
    %c3_52 = arith.constant 3 : index
    %c0_53 = arith.constant 0 : index
    %c0_54 = arith.constant 0 : index
    %59 = vector.load %arg5[%c3_52, %c0_53, %c0_54] : memref<5x10x32xf32, #tpu.memory_space<vmem>>, vector<1x10x32xf32>
    %60 = vector.shape_cast %59 : vector<1x10x32xf32> to vector<10x32xf32>
    %cst_55 = arith.constant dense<0.000000e+00> : vector<10x32xf32>
    %61 = tpu.matmul %58, %60, %cst_55 {dimension_numbers = #tpu.dot_dimension_numbers<[1], [0], [0], [1], [0, 0, 1, 1], [], []>} : vector<10x10xf32>, vector<10x32xf32>, vector<10x32xf32> -> vector<10x32xf32>
    %62 = arith.addf %47, %61 : vector<10x32xf32>
    %c0_56 = arith.constant 0 : index
    %c4 = arith.constant 4 : index
    %c0_57 = arith.constant 0 : index
    %c0_58 = arith.constant 0 : index
    %63 = vector.load %arg1[%c0_56, %c4, %c0_57, %c0_58] : memref<1x5x10x315xf32, #tpu.memory_space<vmem>>, vector<1x1x10x315xf32>
    %64 = vector.shape_cast %63 : vector<1x1x10x315xf32> to vector<10x315xf32>
    %cst_59 = arith.constant dense<0.000000e+00> : vector<10x10xf32>
    %65 = tpu.matmul %64, %0, %cst_59 {dimension_numbers = #tpu.dot_dimension_numbers<[1], [0], [0], [1], [0, 0, 1, 1], [], []>} : vector<10x315xf32>, vector<315x10xf32>, vector<10x10xf32> -> vector<10x10xf32>
    %66 = vector.broadcast %1 : vector<1x10xf32> to vector<10x10xf32>
    %67 = arith.addf %65, %66 : vector<10x10xf32>
    %cst_60 = arith.constant 0.000000e+00 : f32
    %68 = vector.broadcast %cst_60 : f32 to vector<10x10xf32>
    %69 = arith.maximumf %67, %68 : vector<10x10xf32>
    %c0_61 = arith.constant 0 : index
    %c4_62 = arith.constant 4 : index
    %c0_63 = arith.constant 0 : index
    %c0_64 = arith.constant 0 : index
    %70 = vector.load %arg2[%c0_61, %c4_62, %c0_63, %c0_64] : memref<1x5x10x1xf32, #tpu.memory_space<vmem>>, vector<1x1x10x1xf32>
    %71 = vector.shape_cast %70 : vector<1x1x10x1xf32> to vector<10x1xf32>
    %72 = vector.broadcast %71 : vector<10x1xf32> to vector<10x10xf32>
    %73 = arith.mulf %69, %72 : vector<10x10xf32>
    %c4_65 = arith.constant 4 : index
    %c0_66 = arith.constant 0 : index
    %c0_67 = arith.constant 0 : index
    %74 = vector.load %arg5[%c4_65, %c0_66, %c0_67] : memref<5x10x32xf32, #tpu.memory_space<vmem>>, vector<1x10x32xf32>
    %75 = vector.shape_cast %74 : vector<1x10x32xf32> to vector<10x32xf32>
    %cst_68 = arith.constant dense<0.000000e+00> : vector<10x32xf32>
    %76 = tpu.matmul %73, %75, %cst_68 {dimension_numbers = #tpu.dot_dimension_numbers<[1], [0], [0], [1], [0, 0, 1, 1], [], []>} : vector<10x10xf32>, vector<10x32xf32>, vector<10x32xf32> -> vector<10x32xf32>
    %77 = arith.addf %62, %76 : vector<10x32xf32>
    %c0_69 = arith.constant 0 : index
    %c0_70 = arith.constant 0 : index
    %78 = vector.load %arg6[%c0_69, %c0_70] : memref<1x32xf32, #tpu.memory_space<vmem>>, vector<1x32xf32>
    %79 = vector.broadcast %78 : vector<1x32xf32> to vector<10x32xf32>
    %80 = arith.addf %77, %79 : vector<10x32xf32>
    %cst_71 = arith.constant 0.000000e+00 : f32
    %81 = vector.broadcast %cst_71 : f32 to vector<10x32xf32>
    %82 = arith.maximumf %80, %81 : vector<10x32xf32>
    %c0_72 = arith.constant 0 : index
    %c0_73 = arith.constant 0 : index
    %83 = vector.load %arg7[%c0_72, %c0_73] : memref<32x128xf32, #tpu.memory_space<vmem>>, vector<32x128xf32>
    %cst_74 = arith.constant dense<0.000000e+00> : vector<10x128xf32>
    %84 = tpu.matmul %82, %83, %cst_74 {dimension_numbers = #tpu.dot_dimension_numbers<[1], [0], [0], [1], [0, 0, 1, 1], [], []>} : vector<10x32xf32>, vector<32x128xf32>, vector<10x128xf32> -> vector<10x128xf32>
    %c0_75 = arith.constant 0 : index
    %c0_76 = arith.constant 0 : index
    %85 = vector.load %arg9[%c0_75, %c0_76] : memref<1x128xf32, #tpu.memory_space<vmem>>, vector<1x128xf32>
    %86 = vector.broadcast %85 : vector<1x128xf32> to vector<10x128xf32>
    %87 = arith.addf %84, %86 : vector<10x128xf32>
    %c0_77 = arith.constant 0 : index
    %c0_78 = arith.constant 0 : index
    %88 = vector.load %arg19[%c0_77, %c0_78] : memref<10x128xf32, #tpu.memory_space<vmem>>, vector<10x128xf32>
    tpu.vector_store %arg19[%c0_77, %c0_78], %87 {strides = array<i32>} : memref<10x128xf32, #tpu.memory_space<vmem>>, vector<10x128xf32>,
    %c0_79 = arith.constant 0 : index
    %c0_80 = arith.constant 0 : index
    %89 = vector.load %arg8[%c0_79, %c0_80] : memref<32x128xf32, #tpu.memory_space<vmem>>, vector<32x128xf32>
    %c0_81 = arith.constant 0 : index
    %c0_82 = arith.constant 0 : index
    %c0_83 = arith.constant 0 : index
    %c0_84 = arith.constant 0 : index
    %90 = vector.load %arg16[%c0_81, %c0_82, %c0_83, %c0_84] : memref<1x2x2x32xf32, #tpu.memory_space<vmem>>, vector<1x1x2x32xf32>
    %91 = vector.shape_cast %90 : vector<1x1x2x32xf32> to vector<2x32xf32>
    %c0_85 = arith.constant 0 : index
    %c0_86 = arith.constant 0 : index
    %c0_87 = arith.constant 0 : index
    %c0_88 = arith.constant 0 : index
    %92 = vector.load %arg17[%c0_85, %c0_86, %c0_87, %c0_88] : memref<1x2x2x32xf32, #tpu.memory_space<vmem>>, vector<1x1x2x32xf32>
    %93 = vector.shape_cast %92 : vector<1x1x2x32xf32> to vector<2x32xf32>
    %c0_i32 = arith.constant 0 : i32
    %c2_i32 = arith.constant 2 : i32
    %94 = arith.muli %c0_i32, %c2_i32 : i32
    %95 = arith.index_cast %94 : i32 to index
    %c0_89 = arith.constant 0 : index
    %96 = vector.load %arg19[%95, %c0_89] : memref<10x128xf32, #tpu.memory_space<vmem>>, vector<2x128xf32>
    %cst_90 = arith.constant dense<0.000000e+00> : vector<2x128xf32>
    %97 = tpu.matmul %91, %89, %cst_90 {dimension_numbers = #tpu.dot_dimension_numbers<[1], [0], [0], [1], [0, 0, 1, 1], [], []>} : vector<2x32xf32>, vector<32x128xf32>, vector<2x128xf32> -> vector<2x128xf32>
    %98 = arith.addf %96, %97 : vector<2x128xf32>
    %99 = vector.extract_strided_slice %98 {offsets = [0, 0], sizes = [2, 32], strides = [1, 1]} : vector<2x128xf32> to vector<2x32xf32>
    %100 = arith.negf %99 : vector<2x32xf32>
    %101 = math.exp %100 : vector<2x32xf32>
    %cst_91 = arith.constant 1.000000e+00 : f32
    %102 = vector.broadcast %cst_91 : f32 to vector<2x32xf32>
    %103 = arith.addf %102, %101 : vector<2x32xf32>
    %104 = arith.divf %102, %103 : vector<2x32xf32>
    %105 = vector.extract_strided_slice %98 {offsets = [0, 32], sizes = [2, 32], strides = [1, 1]} : vector<2x128xf32> to vector<2x32xf32>
    %106 = arith.negf %105 : vector<2x32xf32>
    %107 = math.exp %106 : vector<2x32xf32>
    %cst_92 = arith.constant 1.000000e+00 : f32
    %108 = vector.broadcast %cst_92 : f32 to vector<2x32xf32>
    %109 = arith.addf %108, %107 : vector<2x32xf32>
    %110 = arith.divf %108, %109 : vector<2x32xf32>
    %111 = vector.extract_strided_slice %98 {offsets = [0, 64], sizes = [2, 32], strides = [1, 1]} : vector<2x128xf32> to vector<2x32xf32>
    %112 = math.tanh %111 : vector<2x32xf32>
    %113 = vector.extract_strided_slice %98 {offsets = [0, 96], sizes = [2, 32], strides = [1, 1]} : vector<2x128xf32> to vector<2x32xf32>
    %114 = arith.negf %113 : vector<2x32xf32>
    %115 = math.exp %114 : vector<2x32xf32>
    %cst_93 = arith.constant 1.000000e+00 : f32
    %116 = vector.broadcast %cst_93 : f32 to vector<2x32xf32>
    %117 = arith.addf %116, %115 : vector<2x32xf32>
    %118 = arith.divf %116, %117 : vector<2x32xf32>
    %119 = arith.mulf %110, %93 : vector<2x32xf32>
    %120 = arith.mulf %104, %112 : vector<2x32xf32>
    %121 = arith.addf %119, %120 : vector<2x32xf32>
    %122 = math.tanh %121 : vector<2x32xf32>
    %123 = arith.mulf %118, %122 : vector<2x32xf32>
    %c1_i32 = arith.constant 1 : i32
    %c2_i32_94 = arith.constant 2 : i32
    %124 = arith.muli %c1_i32, %c2_i32_94 : i32
    %125 = arith.index_cast %124 : i32 to index
    %c0_95 = arith.constant 0 : index
    %126 = vector.load %arg19[%125, %c0_95] : memref<10x128xf32, #tpu.memory_space<vmem>>, vector<2x128xf32>
    %cst_96 = arith.constant dense<0.000000e+00> : vector<2x128xf32>
    %127 = tpu.matmul %123, %89, %cst_96 {dimension_numbers = #tpu.dot_dimension_numbers<[1], [0], [0], [1], [0, 0, 1, 1], [], []>} : vector<2x32xf32>, vector<32x128xf32>, vector<2x128xf32> -> vector<2x128xf32>
    %128 = arith.addf %126, %127 : vector<2x128xf32>
    %129 = vector.extract_strided_slice %128 {offsets = [0, 0], sizes = [2, 32], strides = [1, 1]} : vector<2x128xf32> to vector<2x32xf32>
    %130 = arith.negf %129 : vector<2x32xf32>
    %131 = math.exp %130 : vector<2x32xf32>
    %cst_97 = arith.constant 1.000000e+00 : f32
    %132 = vector.broadcast %cst_97 : f32 to vector<2x32xf32>
    %133 = arith.addf %132, %131 : vector<2x32xf32>
    %134 = arith.divf %132, %133 : vector<2x32xf32>
    %135 = vector.extract_strided_slice %128 {offsets = [0, 32], sizes = [2, 32], strides = [1, 1]} : vector<2x128xf32> to vector<2x32xf32>
    %136 = arith.negf %135 : vector<2x32xf32>
    %137 = math.exp %136 : vector<2x32xf32>
    %cst_98 = arith.constant 1.000000e+00 : f32
    %138 = vector.broadcast %cst_98 : f32 to vector<2x32xf32>
    %139 = arith.addf %138, %137 : vector<2x32xf32>
    %140 = arith.divf %138, %139 : vector<2x32xf32>
    %141 = vector.extract_strided_slice %128 {offsets = [0, 64], sizes = [2, 32], strides = [1, 1]} : vector<2x128xf32> to vector<2x32xf32>
    %142 = math.tanh %141 : vector<2x32xf32>
    %143 = vector.extract_strided_slice %128 {offsets = [0, 96], sizes = [2, 32], strides = [1, 1]} : vector<2x128xf32> to vector<2x32xf32>
    %144 = arith.negf %143 : vector<2x32xf32>
    %145 = math.exp %144 : vector<2x32xf32>
    %cst_99 = arith.constant 1.000000e+00 : f32
    %146 = vector.broadcast %cst_99 : f32 to vector<2x32xf32>
    %147 = arith.addf %146, %145 : vector<2x32xf32>
    %148 = arith.divf %146, %147 : vector<2x32xf32>
    %149 = arith.mulf %140, %121 : vector<2x32xf32>
    %150 = arith.mulf %134, %142 : vector<2x32xf32>
    %151 = arith.addf %149, %150 : vector<2x32xf32>
    %152 = math.tanh %151 : vector<2x32xf32>
    %153 = arith.mulf %148, %152 : vector<2x32xf32>
    %c2_i32_100 = arith.constant 2 : i32
    %c2_i32_101 = arith.constant 2 : i32
    %154 = arith.muli %c2_i32_100, %c2_i32_101 : i32
    %155 = arith.index_cast %154 : i32 to index
    %c0_102 = arith.constant 0 : index
    %156 = vector.load %arg19[%155, %c0_102] : memref<10x128xf32, #tpu.memory_space<vmem>>, vector<2x128xf32>
    %cst_103 = arith.constant dense<0.000000e+00> : vector<2x128xf32>
    %157 = tpu.matmul %153, %89, %cst_103 {dimension_numbers = #tpu.dot_dimension_numbers<[1], [0], [0], [1], [0, 0, 1, 1], [], []>} : vector<2x32xf32>, vector<32x128xf32>, vector<2x128xf32> -> vector<2x128xf32>
    %158 = arith.addf %156, %157 : vector<2x128xf32>
    %159 = vector.extract_strided_slice %158 {offsets = [0, 0], sizes = [2, 32], strides = [1, 1]} : vector<2x128xf32> to vector<2x32xf32>
    %160 = arith.negf %159 : vector<2x32xf32>
    %161 = math.exp %160 : vector<2x32xf32>
    %cst_104 = arith.constant 1.000000e+00 : f32
    %162 = vector.broadcast %cst_104 : f32 to vector<2x32xf32>
    %163 = arith.addf %162, %161 : vector<2x32xf32>
    %164 = arith.divf %162, %163 : vector<2x32xf32>
    %165 = vector.extract_strided_slice %158 {offsets = [0, 32], sizes = [2, 32], strides = [1, 1]} : vector<2x128xf32> to vector<2x32xf32>
    %166 = arith.negf %165 : vector<2x32xf32>
    %167 = math.exp %166 : vector<2x32xf32>
    %cst_105 = arith.constant 1.000000e+00 : f32
    %168 = vector.broadcast %cst_105 : f32 to vector<2x32xf32>
    %169 = arith.addf %168, %167 : vector<2x32xf32>
    %170 = arith.divf %168, %169 : vector<2x32xf32>
    %171 = vector.extract_strided_slice %158 {offsets = [0, 64], sizes = [2, 32], strides = [1, 1]} : vector<2x128xf32> to vector<2x32xf32>
    %172 = math.tanh %171 : vector<2x32xf32>
    %173 = vector.extract_strided_slice %158 {offsets = [0, 96], sizes = [2, 32], strides = [1, 1]} : vector<2x128xf32> to vector<2x32xf32>
    %174 = arith.negf %173 : vector<2x32xf32>
    %175 = math.exp %174 : vector<2x32xf32>
    %cst_106 = arith.constant 1.000000e+00 : f32
    %176 = vector.broadcast %cst_106 : f32 to vector<2x32xf32>
    %177 = arith.addf %176, %175 : vector<2x32xf32>
    %178 = arith.divf %176, %177 : vector<2x32xf32>
    %179 = arith.mulf %170, %151 : vector<2x32xf32>
    %180 = arith.mulf %164, %172 : vector<2x32xf32>
    %181 = arith.addf %179, %180 : vector<2x32xf32>
    %182 = math.tanh %181 : vector<2x32xf32>
    %183 = arith.mulf %178, %182 : vector<2x32xf32>
    %c3_i32 = arith.constant 3 : i32
    %c2_i32_107 = arith.constant 2 : i32
    %184 = arith.muli %c3_i32, %c2_i32_107 : i32
    %185 = arith.index_cast %184 : i32 to index
    %c0_108 = arith.constant 0 : index
    %186 = vector.load %arg19[%185, %c0_108] : memref<10x128xf32, #tpu.memory_space<vmem>>, vector<2x128xf32>
    %cst_109 = arith.constant dense<0.000000e+00> : vector<2x128xf32>
    %187 = tpu.matmul %183, %89, %cst_109 {dimension_numbers = #tpu.dot_dimension_numbers<[1], [0], [0], [1], [0, 0, 1, 1], [], []>} : vector<2x32xf32>, vector<32x128xf32>, vector<2x128xf32> -> vector<2x128xf32>
    %188 = arith.addf %186, %187 : vector<2x128xf32>
    %189 = vector.extract_strided_slice %188 {offsets = [0, 0], sizes = [2, 32], strides = [1, 1]} : vector<2x128xf32> to vector<2x32xf32>
    %190 = arith.negf %189 : vector<2x32xf32>
    %191 = math.exp %190 : vector<2x32xf32>
    %cst_110 = arith.constant 1.000000e+00 : f32
    %192 = vector.broadcast %cst_110 : f32 to vector<2x32xf32>
    %193 = arith.addf %192, %191 : vector<2x32xf32>
    %194 = arith.divf %192, %193 : vector<2x32xf32>
    %195 = vector.extract_strided_slice %188 {offsets = [0, 32], sizes = [2, 32], strides = [1, 1]} : vector<2x128xf32> to vector<2x32xf32>
    %196 = arith.negf %195 : vector<2x32xf32>
    %197 = math.exp %196 : vector<2x32xf32>
    %cst_111 = arith.constant 1.000000e+00 : f32
    %198 = vector.broadcast %cst_111 : f32 to vector<2x32xf32>
    %199 = arith.addf %198, %197 : vector<2x32xf32>
    %200 = arith.divf %198, %199 : vector<2x32xf32>
    %201 = vector.extract_strided_slice %188 {offsets = [0, 64], sizes = [2, 32], strides = [1, 1]} : vector<2x128xf32> to vector<2x32xf32>
    %202 = math.tanh %201 : vector<2x32xf32>
    %203 = vector.extract_strided_slice %188 {offsets = [0, 96], sizes = [2, 32], strides = [1, 1]} : vector<2x128xf32> to vector<2x32xf32>
    %204 = arith.negf %203 : vector<2x32xf32>
    %205 = math.exp %204 : vector<2x32xf32>
    %cst_112 = arith.constant 1.000000e+00 : f32
    %206 = vector.broadcast %cst_112 : f32 to vector<2x32xf32>
    %207 = arith.addf %206, %205 : vector<2x32xf32>
    %208 = arith.divf %206, %207 : vector<2x32xf32>
    %209 = arith.mulf %200, %181 : vector<2x32xf32>
    %210 = arith.mulf %194, %202 : vector<2x32xf32>
    %211 = arith.addf %209, %210 : vector<2x32xf32>
    %212 = math.tanh %211 : vector<2x32xf32>
    %213 = arith.mulf %208, %212 : vector<2x32xf32>
    %c4_i32 = arith.constant 4 : i32
    %c2_i32_113 = arith.constant 2 : i32
    %214 = arith.muli %c4_i32, %c2_i32_113 : i32
    %215 = arith.index_cast %214 : i32 to index
    %c0_114 = arith.constant 0 : index
    %216 = vector.load %arg19[%215, %c0_114] : memref<10x128xf32, #tpu.memory_space<vmem>>, vector<2x128xf32>
    %cst_115 = arith.constant dense<0.000000e+00> : vector<2x128xf32>
    %217 = tpu.matmul %213, %89, %cst_115 {dimension_numbers = #tpu.dot_dimension_numbers<[1], [0], [0], [1], [0, 0, 1, 1], [], []>} : vector<2x32xf32>, vector<32x128xf32>, vector<2x128xf32> -> vector<2x128xf32>
    %218 = arith.addf %216, %217 : vector<2x128xf32>
    %219 = vector.extract_strided_slice %218 {offsets = [0, 0], sizes = [2, 32], strides = [1, 1]} : vector<2x128xf32> to vector<2x32xf32>
    %220 = arith.negf %219 : vector<2x32xf32>
    %221 = math.exp %220 : vector<2x32xf32>
    %cst_116 = arith.constant 1.000000e+00 : f32
    %222 = vector.broadcast %cst_116 : f32 to vector<2x32xf32>
    %223 = arith.addf %222, %221 : vector<2x32xf32>
    %224 = arith.divf %222, %223 : vector<2x32xf32>
    %225 = vector.extract_strided_slice %218 {offsets = [0, 32], sizes = [2, 32], strides = [1, 1]} : vector<2x128xf32> to vector<2x32xf32>
    %226 = arith.negf %225 : vector<2x32xf32>
    %227 = math.exp %226 : vector<2x32xf32>
    %cst_117 = arith.constant 1.000000e+00 : f32
    %228 = vector.broadcast %cst_117 : f32 to vector<2x32xf32>
    %229 = arith.addf %228, %227 : vector<2x32xf32>
    %230 = arith.divf %228, %229 : vector<2x32xf32>
    %231 = vector.extract_strided_slice %218 {offsets = [0, 64], sizes = [2, 32], strides = [1, 1]} : vector<2x128xf32> to vector<2x32xf32>
    %232 = math.tanh %231 : vector<2x32xf32>
    %233 = vector.extract_strided_slice %218 {offsets = [0, 96], sizes = [2, 32], strides = [1, 1]} : vector<2x128xf32> to vector<2x32xf32>
    %234 = arith.negf %233 : vector<2x32xf32>
    %235 = math.exp %234 : vector<2x32xf32>
    %cst_118 = arith.constant 1.000000e+00 : f32
    %236 = vector.broadcast %cst_118 : f32 to vector<2x32xf32>
    %237 = arith.addf %236, %235 : vector<2x32xf32>
    %238 = arith.divf %236, %237 : vector<2x32xf32>
    %239 = arith.mulf %230, %211 : vector<2x32xf32>
    %240 = arith.mulf %224, %232 : vector<2x32xf32>
    %241 = arith.addf %239, %240 : vector<2x32xf32>
    %242 = math.tanh %241 : vector<2x32xf32>
    %243 = arith.mulf %238, %242 : vector<2x32xf32>
    %c5_i32 = arith.constant 5 : i32
    %244 = vector.extract_strided_slice %82 {offsets = [8, 0], sizes = [2, 32], strides = [1, 1]} : vector<10x32xf32> to vector<2x32xf32>
    %c0_119 = arith.constant 0 : index
    %c0_120 = arith.constant 0 : index
    %245 = vector.load %arg10[%c0_119, %c0_120] : memref<32x128xf32, #tpu.memory_space<vmem>>, vector<32x128xf32>
    %cst_121 = arith.constant dense<0.000000e+00> : vector<2x128xf32>
    %246 = tpu.matmul %244, %245, %cst_121 {dimension_numbers = #tpu.dot_dimension_numbers<[1], [0], [0], [1], [0, 0, 1, 1], [], []>} : vector<2x32xf32>, vector<32x128xf32>, vector<2x128xf32> -> vector<2x128xf32>
    %c0_122 = arith.constant 0 : index
    %c1_123 = arith.constant 1 : index
    %c0_124 = arith.constant 0 : index
    %c0_125 = arith.constant 0 : index
    %247 = vector.load %arg16[%c0_122, %c1_123, %c0_124, %c0_125] : memref<1x2x2x32xf32, #tpu.memory_space<vmem>>, vector<1x1x2x32xf32>
    %248 = vector.shape_cast %247 : vector<1x1x2x32xf32> to vector<2x32xf32>
    %c0_126 = arith.constant 0 : index
    %c0_127 = arith.constant 0 : index
    %249 = vector.load %arg11[%c0_126, %c0_127] : memref<32x128xf32, #tpu.memory_space<vmem>>, vector<32x128xf32>
    %cst_128 = arith.constant dense<0.000000e+00> : vector<2x128xf32>
    %250 = tpu.matmul %248, %249, %cst_128 {dimension_numbers = #tpu.dot_dimension_numbers<[1], [0], [0], [1], [0, 0, 1, 1], [], []>} : vector<2x32xf32>, vector<32x128xf32>, vector<2x128xf32> -> vector<2x128xf32>
    %251 = arith.addf %246, %250 : vector<2x128xf32>
    %c0_129 = arith.constant 0 : index
    %c0_130 = arith.constant 0 : index
    %252 = vector.load %arg12[%c0_129, %c0_130] : memref<1x128xf32, #tpu.memory_space<vmem>>, vector<1x128xf32>
    %253 = vector.broadcast %252 : vector<1x128xf32> to vector<2x128xf32>
    %254 = arith.addf %251, %253 : vector<2x128xf32>
    %c0_131 = arith.constant 0 : index
    %c1_132 = arith.constant 1 : index
    %c0_133 = arith.constant 0 : index
    %c0_134 = arith.constant 0 : index
    %255 = vector.load %arg17[%c0_131, %c1_132, %c0_133, %c0_134] : memref<1x2x2x32xf32, #tpu.memory_space<vmem>>, vector<1x1x2x32xf32>
    %256 = vector.shape_cast %255 : vector<1x1x2x32xf32> to vector<2x32xf32>
    %257 = vector.extract_strided_slice %254 {offsets = [0, 0], sizes = [2, 32], strides = [1, 1]} : vector<2x128xf32> to vector<2x32xf32>
    %258 = arith.negf %257 : vector<2x32xf32>
    %259 = math.exp %258 : vector<2x32xf32>
    %cst_135 = arith.constant 1.000000e+00 : f32
    %260 = vector.broadcast %cst_135 : f32 to vector<2x32xf32>
    %261 = arith.addf %260, %259 : vector<2x32xf32>
    %262 = arith.divf %260, %261 : vector<2x32xf32>
    %263 = vector.extract_strided_slice %254 {offsets = [0, 32], sizes = [2, 32], strides = [1, 1]} : vector<2x128xf32> to vector<2x32xf32>
    %264 = arith.negf %263 : vector<2x32xf32>
    %265 = math.exp %264 : vector<2x32xf32>
    %cst_136 = arith.constant 1.000000e+00 : f32
    %266 = vector.broadcast %cst_136 : f32 to vector<2x32xf32>
    %267 = arith.addf %266, %265 : vector<2x32xf32>
    %268 = arith.divf %266, %267 : vector<2x32xf32>
    %269 = vector.extract_strided_slice %254 {offsets = [0, 64], sizes = [2, 32], strides = [1, 1]} : vector<2x128xf32> to vector<2x32xf32>
    %270 = math.tanh %269 : vector<2x32xf32>
    %271 = vector.extract_strided_slice %254 {offsets = [0, 96], sizes = [2, 32], strides = [1, 1]} : vector<2x128xf32> to vector<2x32xf32>
    %272 = arith.negf %271 : vector<2x32xf32>
    %273 = math.exp %272 : vector<2x32xf32>
    %cst_137 = arith.constant 1.000000e+00 : f32
    %274 = vector.broadcast %cst_137 : f32 to vector<2x32xf32>
    %275 = arith.addf %274, %273 : vector<2x32xf32>
    %276 = arith.divf %274, %275 : vector<2x32xf32>
    %277 = arith.mulf %268, %256 : vector<2x32xf32>
    %278 = arith.mulf %262, %270 : vector<2x32xf32>
    %279 = arith.addf %277, %278 : vector<2x32xf32>
    %280 = math.tanh %279 : vector<2x32xf32>
    %281 = arith.mulf %276, %280 : vector<2x32xf32>
    %c0_138 = arith.constant 0 : index
    %c0_139 = arith.constant 0 : index
    %282 = vector.load %arg13[%c0_138, %c0_139] : memref<32x1xf32, #tpu.memory_space<vmem>>, vector<32x1xf32>
    %cst_140 = arith.constant dense<0.000000e+00> : vector<2x1xf32>
    %283 = tpu.matmul %243, %282, %cst_140 {dimension_numbers = #tpu.dot_dimension_numbers<[1], [0], [0], [1], [0, 0, 1, 1], [], []>} : vector<2x32xf32>, vector<32x1xf32>, vector<2x1xf32> -> vector<2x1xf32>
    %c0_141 = arith.constant 0 : index
    %c0_142 = arith.constant 0 : index
    %284 = vector.load %arg14[%c0_141, %c0_142] : memref<32x1xf32, #tpu.memory_space<vmem>>, vector<32x1xf32>
    %cst_143 = arith.constant dense<0.000000e+00> : vector<2x1xf32>
    %285 = tpu.matmul %281, %284, %cst_143 {dimension_numbers = #tpu.dot_dimension_numbers<[1], [0], [0], [1], [0, 0, 1, 1], [], []>} : vector<2x32xf32>, vector<32x1xf32>, vector<2x1xf32> -> vector<2x1xf32>
    %286 = arith.addf %283, %285 : vector<2x1xf32>
    %c0_144 = arith.constant 0 : index
    %c0_145 = arith.constant 0 : index
    %287 = vector.load %arg15[%c0_144, %c0_145] : memref<1x1xf32, #tpu.memory_space<vmem>>, vector<1x1xf32>
    %288 = vector.broadcast %287 : vector<1x1xf32> to vector<2x1xf32>
    %289 = arith.addf %286, %288 : vector<2x1xf32>
    %290 = arith.negf %289 : vector<2x1xf32>
    %291 = math.exp %290 : vector<2x1xf32>
    %cst_146 = arith.constant 1.000000e+00 : f32
    %292 = vector.broadcast %cst_146 : f32 to vector<2x1xf32>
    %293 = arith.addf %292, %291 : vector<2x1xf32>
    %294 = arith.divf %292, %293 : vector<2x1xf32>
    %c0_147 = arith.constant 0 : index
    %c0_148 = arith.constant 0 : index
    %c0_149 = arith.constant 0 : index
    %295 = vector.load %arg18[%c0_147, %c0_148, %c0_149] : memref<1x2x1xf32, #tpu.memory_space<vmem>>, vector<1x2x1xf32>
    %296 = vector.shape_cast %295 : vector<1x2x1xf32> to vector<2x1xf32>
    %297 = vector.shape_cast %294 : vector<2x1xf32> to vector<1x2x1xf32>
    tpu.vector_store %arg18[%c0_147, %c0_148, %c0_149], %297 {strides = array<i32>} : memref<1x2x1xf32, #tpu.memory_space<vmem>>, vector<1x2x1xf32>,
    return
  }
  func.func @transform_0(%arg0: i32) -> (i32, i32, i32, i32) {
    %c0_i32 = arith.constant 0 : i32
    %c0_i32_0 = arith.constant 0 : i32
    %c0_i32_1 = arith.constant 0 : i32
    %c0_i32_2 = arith.constant 0 : i32
    return %arg0, %c0_i32, %c0_i32_0, %c0_i32_1 : i32, i32, i32, i32
  }
  func.func @transform_1(%arg0: i32) -> (i32, i32, i32, i32) {
    %c0_i32 = arith.constant 0 : i32
    %c0_i32_0 = arith.constant 0 : i32
    %c0_i32_1 = arith.constant 0 : i32
    %c0_i32_2 = arith.constant 0 : i32
    return %arg0, %c0_i32, %c0_i32_0, %c0_i32_1 : i32, i32, i32, i32
  }
  func.func @transform_2(%arg0: i32) -> (i32, i32) {
    %c0_i32 = arith.constant 0 : i32
    %c0_i32_0 = arith.constant 0 : i32
    %c0_i32_1 = arith.constant 0 : i32
    return %c0_i32, %c0_i32_0 : i32, i32
  }
  func.func @transform_3(%arg0: i32) -> (i32, i32) {
    %c0_i32 = arith.constant 0 : i32
    %c0_i32_0 = arith.constant 0 : i32
    %c0_i32_1 = arith.constant 0 : i32
    return %c0_i32, %c0_i32_0 : i32, i32
  }
  func.func @transform_4(%arg0: i32) -> (i32, i32, i32) {
    %c0_i32 = arith.constant 0 : i32
    %c0_i32_0 = arith.constant 0 : i32
    %c0_i32_1 = arith.constant 0 : i32
    %c0_i32_2 = arith.constant 0 : i32
    return %c0_i32, %c0_i32_0, %c0_i32_1 : i32, i32, i32
  }
  func.func @transform_5(%arg0: i32) -> (i32, i32) {
    %c0_i32 = arith.constant 0 : i32
    %c0_i32_0 = arith.constant 0 : i32
    %c0_i32_1 = arith.constant 0 : i32
    return %c0_i32, %c0_i32_0 : i32, i32
  }
  func.func @transform_6(%arg0: i32) -> (i32, i32) {
    %c0_i32 = arith.constant 0 : i32
    %c0_i32_0 = arith.constant 0 : i32
    %c0_i32_1 = arith.constant 0 : i32
    return %c0_i32, %c0_i32_0 : i32, i32
  }
  func.func @transform_7(%arg0: i32) -> (i32, i32) {
    %c0_i32 = arith.constant 0 : i32
    %c0_i32_0 = arith.constant 0 : i32
    %c0_i32_1 = arith.constant 0 : i32
    return %c0_i32, %c0_i32_0 : i32, i32
  }
  func.func @transform_8(%arg0: i32) -> (i32, i32) {
    %c0_i32 = arith.constant 0 : i32
    %c0_i32_0 = arith.constant 0 : i32
    %c0_i32_1 = arith.constant 0 : i32
    return %c0_i32, %c0_i32_0 : i32, i32
  }
  func.func @transform_9(%arg0: i32) -> (i32, i32) {
    %c0_i32 = arith.constant 0 : i32
    %c0_i32_0 = arith.constant 0 : i32
    %c0_i32_1 = arith.constant 0 : i32
    return %c0_i32, %c0_i32_0 : i32, i32
  }
  func.func @transform_10(%arg0: i32) -> (i32, i32) {
    %c0_i32 = arith.constant 0 : i32
    %c0_i32_0 = arith.constant 0 : i32
    %c0_i32_1 = arith.constant 0 : i32
    return %c0_i32, %c0_i32_0 : i32, i32
  }
  func.func @transform_11(%arg0: i32) -> (i32, i32) {
    %c0_i32 = arith.constant 0 : i32
    %c0_i32_0 = arith.constant 0 : i32
    %c0_i32_1 = arith.constant 0 : i32
    return %c0_i32, %c0_i32_0 : i32, i32
  }
  func.func @transform_12(%arg0: i32) -> (i32, i32) {
    %c0_i32 = arith.constant 0 : i32
    %c0_i32_0 = arith.constant 0 : i32
    %c0_i32_1 = arith.constant 0 : i32
    return %c0_i32, %c0_i32_0 : i32, i32
  }
  func.func @transform_13(%arg0: i32) -> (i32, i32) {
    %c0_i32 = arith.constant 0 : i32
    %c0_i32_0 = arith.constant 0 : i32
    %c0_i32_1 = arith.constant 0 : i32
    return %c0_i32, %c0_i32_0 : i32, i32
  }
  func.func @transform_14(%arg0: i32) -> (i32, i32) {
    %c0_i32 = arith.constant 0 : i32
    %c0_i32_0 = arith.constant 0 : i32
    %c0_i32_1 = arith.constant 0 : i32
    return %c0_i32, %c0_i32_0 : i32, i32
  }
  func.func @transform_15(%arg0: i32) -> (i32, i32, i32, i32) {
    %c0_i32 = arith.constant 0 : i32
    %c0_i32_0 = arith.constant 0 : i32
    %c0_i32_1 = arith.constant 0 : i32
    %c0_i32_2 = arith.constant 0 : i32
    return %arg0, %c0_i32, %c0_i32_0, %c0_i32_1 : i32, i32, i32, i32
  }
  func.func @transform_16(%arg0: i32) -> (i32, i32, i32, i32) {
    %c0_i32 = arith.constant 0 : i32
    %c0_i32_0 = arith.constant 0 : i32
    %c0_i32_1 = arith.constant 0 : i32
    %c0_i32_2 = arith.constant 0 : i32
    return %arg0, %c0_i32, %c0_i32_0, %c0_i32_1 : i32, i32, i32, i32
  }
  func.func @transform_17(%arg0: i32) -> (i32, i32, i32) {
    %c0_i32 = arith.constant 0 : i32
    %c0_i32_0 = arith.constant 0 : i32
    %c0_i32_1 = arith.constant 0 : i32
    return %arg0, %c0_i32, %c0_i32_0 : i32, i32, i32
  }
}

</mosaic_0001>

<bundles_post_ra>
// kernel: tpu_custom_call.1
= control target key start
LH: loop header
LB: loop body
LE: loop exit
PB: predicated region body
PF: predicated region fallthrough
CT: control target
= control target key end

     0   :  { %s2266_s26 = smov 0   ;;  %s2967_s0 = inlined_call_operand.vmem [shape: f32[2,5,10,315], index: 0, kind: input, shape index: {}]   ;;  %s2968_s1 = inlined_call_operand.vmem [shape: f32[2,5,10,1], index: 1, kind: input, shape index: {}]   ;;  %s2969_s2 = inlined_call_operand.vmem [shape: f32[315,10], index: 2, kind: input, shape index: {}]   ;;  %s2970_s3 = inlined_call_operand.vmem [shape: f32[1,10], index: 3, kind: input, shape index: {}]   ;;  %s2971_s4 = inlined_call_operand.vmem [shape: f32[5,10,32], index: 4, kind: input, shape index: {}]   ;;  %s2972_s5 = inlined_call_operand.vmem [shape: f32[1,32], index: 5, kind: input, shape index: {}]   ;;  %s2973_s6 = inlined_call_operand.vmem [shape: f32[32,128], index: 6, kind: input, shape index: {}]   ;;  %s2974_s7 = inlined_call_operand.vmem [shape: f32[32,128], index: 7, kind: input, shape index: {}]   ;;  %s2975_s8 = inlined_call_operand.vmem [shape: f32[1,128], index: 8, kind: input, shape index: {}]   ;;  %s2976_s9 = inlined_call_operand.vmem [shape: f32[32,128], index: 9, kind: input, shape index: {}]   ;;  %s2977_s10 = inlined_call_operand.vmem [shape: f32[32,128], index: 10, kind: input, shape index: {}]   ;;  %s2978_s11 = inlined_call_operand.vmem [shape: f32[1,128], index: 11, kind: input, shape index: {}]   ;;  %s2979_s12 = inlined_call_operand.vmem [shape: f32[32,1], index: 12, kind: input, shape index: {}]   ;;  %s2980_s13 = inlined_call_operand.vmem [shape: f32[32,1], index: 13, kind: input, shape index: {}]   ;;  %s2981_s14 = inlined_call_operand.<no memory space> [shape: f32[1,1], index: 14, kind: input, shape index: {}]   ;;  %s2982_s15 = inlined_call_operand.vmem [shape: f32[2,2,2,32], index: 15, kind: input, shape index: {}]   ;;  %s2983_s16 = inlined_call_operand.vmem [shape: f32[2,2,2,32], index: 16, kind: input, shape index: {}]   ;;  %s2984_s17 = inlined_call_operand.vmem [shape: f32[2,2,1], index: 17, kind: output, shape index: {}]  }
   0x1   :  { %2985 = sst [smem:[#allocation4_spill]] %s2967_s0  ;;  %v22_v0 = vstv %s2981_s14 }
   0x2   :  { %2986 = sst [smem:[#allocation5_spill]] %s2968_s1  ;;  %23 = vst [vmem:[#allocation3] sm:$0x1] %v22_v0 }
   0x3 LB: > { %s1983_s27 = sadd.s32 4294967295, %s2168_s26   ;;  %p1987_p0 = scmp.ge.s32.totalorder %s2168_s26, 1  ;;  %s2168_s26 = sphi %s2266_s26, %s29_s26  }
   0x4   : > { %p519_p1 = scmp.lt.s32.totalorder %s2168_s26, 3 }
   0x6   : > { %p520_p2 = pnand %p1987_p0, %p519_p1 }
   0x7   : > { %p2321_p3 = scmp.lt.s32.totalorder (!%p520_p2), %s1983_s27, 1  ;;  %s2988_s24 = sld [smem:[#allocation4_spill]] (!%p520_p2) }
   0x8   : > { %523 = sbr.rel (%p520_p2) target bundleno = 3860 (0xf14), region = 88  ;;  %s2989_s1 = sld [smem:[#allocation5_spill]] (!%p520_p2) }
   0x9   : > { %s2171_s29 = smov (!%p520_p2), 32   ;;  %s2172_s14 = smov (!%p520_p2), 64  }
   0xd   : > { %v2277_v1 = vld [vmem:[%s2969_s2 + $0x138] sm:$0x7]  ;;  %vm666_vm0 = vcmask 1042432   ;;  %v2287_v3 = vld [vmem:[%s2969_s2 + $0x130] sm:$0xff]  ;;  %v2306_v6 = vld [vmem:[%s2969_s2 + $0x128] sm:$0xff]  ;;  %s2991_s27 = smov (!%p2321_p3, %s1983_s27), 1 }
   0xe   : > { %v2282_v2 = vld [vmem:[%s2969_s2 + $0x78] sm:$0xff]  ;;  %1995 = vmatpush.msk.msra.mxu2 %vm666_vm0, %v2277_v1  ;;  %v2295_v4 = vld [vmem:[%s2969_s2 + $0x70] sm:$0xff]  ;;  %v2311_v7 = vld [vmem:[%s2969_s2 + $0x68] sm:$0xff]  ;;  %s2089_s25 = smul.u32 240, %s2991_s27  ;;  %vm659_vm1 = vcmask 482304   ;;  %v2170_v46 = vmov 0  }
   0xf   : > { %670 = vmatpush.msra.mxu0 %v2282_v2  ;;  %v2300_v5 = vld [vmem:[%s2969_s2 + $0xf8] sm:$0xff]  ;;  %v2316_v8 = vld [vmem:[%s2969_s2 + $0xf0] sm:$0xff]  ;;  %770 = vmatpush.msra.mxu3 %v2282_v2  ;;  %v2330_v9 = vld [vmem:[%s2969_s2 + $0xe8] sm:$0xff]  ;;  %s2090_s30 = smul.u32 80, %s2991_s27  ;;  %vm866_vm2 = vcmask 1041408   ;;  %vm859_vm3 = vcmask 80896  }
  0x10   : > { %693 = vmatpush.msra.mxu1 %v2300_v5  ;;  %725 = vmatpush.msra.mxu2 %v2287_v3  ;;  %v2336_v10 = vld [vmem:[%s2969_s2 + $0x120] sm:$0xff]  ;;  %v2355_v13 = vld [vmem:[%s2969_s2 + $0x118] sm:$0xff]  ;;  %v2380_v16 = vld [vmem:[%s2969_s2 + $0x110] sm:$0xff]  ;;  %s2444_s28 = scalar_lea.vmem %s2988_s24, %s2089_s25  ;;  %s2087_s18 = sshll.u32 %s2991_s27, 2  ;;  %vm1349_vm4 = vcmask 261120  }
  0x11   : > { %671 = vmatpush.msra.mxu0 %v2295_v4  ;;  %v2341_v11 = vld [vmem:[%s2969_s2 + $0x60] sm:$0xff]  ;;  %771 = vmatpush.msra.mxu3 %v2295_v4  ;;  %v2360_v14 = vld [vmem:[%s2969_s2 + $0x58] sm:$0xff]  ;;  %v2385_v17 = vld [vmem:[%s2969_s2 + $0x50] sm:$0xff]  ;;  %s2564_s20 = scalar_lea.vmem %s2989_s1, %s2090_s30  ;;  %s2837_s19 = scalar_lea.vmem %s2982_s15, %s2087_s18 }
  0x12   : > { %694 = vmatpush.msra.mxu1 %v2316_v8  ;;  %726 = vmatpush.msra.mxu2 %v2306_v6  ;;  %v2349_v12 = vld [vmem:[%s2969_s2 + $0xe0] sm:$0xff]  ;;  %v2374_v15 = vld [vmem:[%s2969_s2 + $0xd8] sm:$0xff]  ;;  %v2393_v18 = vld [vmem:[%s2969_s2 + $0xd0] sm:$0xff] }
  0x13   : > { %672 = vmatpush.msra.mxu0 %v2311_v7  ;;  %772 = vmatpush.msra.mxu3 %v2311_v7  ;;  %v2399_v19 = vld [vmem:[%s2969_s2 + $0x108] sm:$0xff]  ;;  %v2419_v22 = vld [vmem:[%s2969_s2 + $0x100] sm:$0xff]  ;;  %v2438_v25 = vld [vmem:[%s2969_s2 + $0x38] sm:$0xff] }
  0x14   : > { %695 = vmatpush.msra.mxu1 %v2330_v9  ;;  %727 = vmatpush.msra.mxu2 %v2336_v10  ;;  %v2404_v20 = vld [vmem:[%s2969_s2 + $0x48] sm:$0xff]  ;;  %v2424_v23 = vld [vmem:[%s2969_s2 + $0x40] sm:$0xff]  ;;  %v2451_v26 = vld [vmem:[%s2969_s2 + $0xb8] sm:$0xff] }
  0x15   : > { %673 = vmatpush.msra.mxu0 %v2341_v11  ;;  %773 = vmatpush.msra.mxu3 %v2341_v11  ;;  %v2413_v21 = vld [vmem:[%s2969_s2 + $0xc8] sm:$0xff]  ;;  %v2432_v24 = vld [vmem:[%s2969_s2 + $0xc0] sm:$0xff]  ;;  %v2458_v27 = vld [vmem:[%s2969_s2 + $0x30] sm:$0xff] }
  0x16   : > { %696 = vmatpush.msra.mxu1 %v2349_v12  ;;  %728 = vmatpush.msra.mxu2 %v2355_v13  ;;  %v2463_v28 = vld [vmem:[%s2969_s2 + $0x28] sm:$0xff]  ;;  %v2469_v29 = vld [vmem:[%s2969_s2 + $0xb0] sm:$0xff]  ;;  %v2487_v32 = vld [vmem:[%s2969_s2 + $0x20] sm:$0xff] }
  0x17   : > { %674 = vmatpush.msra.mxu0 %v2360_v14  ;;  %774 = vmatpush.msra.mxu3 %v2360_v14  ;;  %v652_v30 = vld [vmem:[%s2444_s28 + $0x10] sm:$0xff]  ;;  %v2479_v31 = vld [vmem:[%s2969_s2 + $0xa8] sm:$0xff]  ;;  %v2493_v33 = vld [vmem:[%s2969_s2 + $0xa0] sm:$0xff] }
  0x18   : > { %697 = vmatpush.msra.mxu1 %v2374_v15  ;;  %729 = vmatpush.msra.mxu2 %v2380_v16  ;;  %v2501_v34 = vld [vmem:[%s2969_s2 + $0x18] sm:$0xff]  ;;  %v2515_v36 = vld [vmem:[%s2969_s2 + $0x10] sm:$0xff]  ;;  %v2529_v38 = vld [vmem:[%s2969_s2 + $0x8] sm:$0xff] }
  0x19   : > { %675 = vmatpush.msra.mxu0 %v2385_v17  ;;  %775 = vmatpush.msra.mxu3 %v2385_v17  ;;  %v2507_v35 = vld [vmem:[%s2969_s2 + $0x98] sm:$0xff]  ;;  %v2521_v37 = vld [vmem:[%s2969_s2 + $0x90] sm:$0xff]  ;;  %v2535_v39 = vld [vmem:[%s2969_s2 + $0x88] sm:$0xff] }
  0x1a   : > { %698 = vmatpush.msra.mxu1 %v2393_v18  ;;  %730 = vmatpush.msra.mxu2 %v2399_v19  ;;  %v2543_v40 = vld [vmem:[%s2969_s2] sm:$0xff]  ;;  %v655_v41 = vld [vmem:[%s2444_s28 + $0x28] sm:$0x3]  ;;  %v2007_v45 = vld [vmem:[%s2564_s20 + $0x10] sm:$0xff] }
  0x1b   : > { %676 = vmatpush.msra.mxu0 %v2404_v20  ;;  %776 = vmatpush.msra.mxu3 %v2404_v20  ;;  %v650_v42 = vld [vmem:[%s2444_s28] sm:$0xff]  ;;  %v651_v44 = vld [vmem:[%s2444_s28 + $0x8] sm:$0xff]  ;;  %v653_v47 = vld [vmem:[%s2444_s28 + $0x18] sm:$0x3] }
  0x1c   : > { %699 = vmatpush.msra.mxu1 %v2413_v21  ;;  %731 = vmatpush.msra.mxu2 %v2419_v22  ;;  %v2555_v43 = vld [vmem:[%s2969_s2 + $0x80] sm:$0xff]  ;;  %v1998_v48 = vld [vmem:[%s2444_s28 + $0x30] sm:$0xff]  ;;  %v2008_v51 = vld [vmem:[%s2564_s20 + $0x18] sm:$0x3] }
  0x1d   : > { %677 = vmatpush.msra.mxu0 %v2424_v23  ;;  %777 = vmatpush.msra.mxu3 %v2424_v23  ;;  %v654_v49 = vld [vmem:[%s2444_s28 + $0x20] sm:$0x3]  ;;  %v1999_v52 = vld [vmem:[%s2444_s28 + $0x38] sm:$0xff]  ;;  %v2001_v54 = vld [vmem:[%s2444_s28 + $0x48] sm:$0x3] }
  0x1e   : > { %793 = vmatpush.msrb.mxu2 %v2300_v5  ;;  %700 = vmatpush.msra.mxu1 %v2432_v24  ;;  %v741_v50 = vld [vmem:[%s2564_s20] sm:$0xff]  ;;  %v742_v55 = vld [vmem:[%s2564_s20 + $0x8] sm:$0x3]  ;;  %v2042_v56 = vld [vmem:[%s2564_s20 + $0x30] sm:$0xff] }
  0x1f   : > { %678 = vmatpush.msra.mxu0 %v2438_v25  ;;  %778 = vmatpush.msra.mxu3 %v2438_v25  ;;  %v2000_v53 = vld [vmem:[%s2444_s28 + $0x40] sm:$0xff]  ;;  %v2002_v57 = vld [vmem:[%s2444_s28 + $0x50] sm:$0x3]  ;;  %v2003_v58 = vld [vmem:[%s2444_s28 + $0x58] sm:$0x3] }
  0x20   : > { %794 = vmatpush.msrb.mxu2 %v2316_v8  ;;  %701 = vmatpush.msra.mxu1 %v2451_v26  ;;  %v2059_v59 = vld [vmem:[%s2564_s20 + $0x48] sm:$0x3]  ;;  %v755_v61 = vld [vmem:[%s2971_s4] sm:$0xff]  ;;  %v2010_v62 = vld [vmem:[%s2971_s4 + $0x18] sm:$0x3] }
  0x21   : > { %679 = vmatpush.msra.mxu0 %v2458_v27  ;;  %1996 = vmatmul.msk.f32.vlgmr.msra.gmra.mxu2 %vm659_vm1, %v652_v30  ;;  %v756_v60 = vld [vmem:[%s2971_s4 + $0x8] sm:$0x3]  ;;  %v2009_v63 = vld [vmem:[%s2971_s4 + $0x10] sm:$0xff]  ;;  %v2676_v0 = vld [vmem:[%s2970_s3] ss:$0 sm:$0xff] }
  0x22   : > { %795 = vmatpush.msrb.mxu2 %v2330_v9  ;;  %702 = vmatpush.msra.mxu1 %v2469_v29 }
  0x23   : > { %680 = vmatpush.msra.mxu0 %v2463_v28  ;;  %779 = vmatpush.msra.mxu3 %v2458_v27 }
  0x24   : > { %796 = vmatpush.msrb.mxu2 %v2349_v12  ;;  %703 = vmatpush.msra.mxu1 %v2479_v31 }
  0x25   : > { %681 = vmatpush.msra.mxu0 %v2487_v32  ;;  %780 = vmatpush.msra.mxu3 %v2463_v28 }
  0x26   : > { %797 = vmatpush.msrb.mxu2 %v2374_v15  ;;  %704 = vmatpush.msra.mxu1 %v2493_v33 }
  0x27   : > { %682 = vmatpush.msra.mxu0 %v2501_v34  ;;  %781 = vmatpush.msra.mxu3 %v2487_v32 }
  0x28   : > { %798 = vmatpush.msrb.mxu2 %v2393_v18  ;;  %705 = vmatpush.msra.mxu1 %v2507_v35 }
  0x29   : > { %683 = vmatpush.msra.mxu0 %v2515_v36  ;;  %782 = vmatpush.msra.mxu3 %v2501_v34 }
  0x2a   : > { %799 = vmatpush.msrb.mxu2 %v2413_v21  ;;  %706 = vmatpush.msra.mxu1 %v2521_v37 }
  0x2b   : > { %684 = vmatpush.msra.mxu0 %v2529_v38  ;;  %1997 = vmatmul.msk.f32.gmra.mxu2 %vm659_vm1, %v655_v41 }
  0x2c   : > { %800 = vmatpush.msrb.mxu2 %v2432_v24  ;;  %707 = vmatpush.msra.mxu1 %v2535_v39 }
  0x2d   : > { %685 = vmatpush.msra.mxu0 %v2543_v40  ;;  %783 = vmatpush.msra.mxu3 %v2515_v36 }
  0x2e   : > { %801 = vmatpush.msrb.mxu2 %v2451_v26  ;;  %686 = vmatmul.f32.vlgmr.msra.gmra.mxu0 %v650_v42 }
  0x2f   : > { %708 = vmatpush.msra.mxu1 %v2555_v43  ;;  %2004 = vmatpush.msk.msrb.mxu0 %vm666_vm0, %v2277_v1 }
  0x30   : > { %802 = vmatpush.msrb.mxu2 %v2469_v29  ;;  %709 = vmatmul.f32.vlgmr.msra.gmra.mxu1 %v651_v44 }
  0x31   : > { %825 = vmatpush.msrb.mxu0 %v2287_v3  ;;  %2102 = vset.pattern.permute.xlu0 %v2170_v46 }
  0x32   : > { %803 = vmatpush.msrb.mxu2 %v2479_v31  ;;  %784 = vmatpush.msra.mxu3 %v2529_v38 }
  0x33   : > { %826 = vmatpush.msrb.mxu0 %v2306_v6  ;;  %846 = vperm.xlu0 %2102, %v2007_v45  }
  0x34   : > { %804 = vmatpush.msrb.mxu2 %v2493_v33  ;;  %785 = vmatpush.msra.mxu3 %v2543_v40 }
  0x35   : > { %827 = vmatpush.msrb.mxu0 %v2336_v10  ;;  %786 = vmatmul.f32.vlgmr.msra.gmra.mxu3 %v1998_v48  ;;  %v2019_v48 = vld [vmem:[%s2444_s28 + $0x70] sm:$0xff] }
  0x36   : > { %805 = vmatpush.msrb.mxu2 %v2507_v35  ;;  %689 = vmatmul.f32.gmra.mxu0 %v653_v47 }
  0x37   : > { %828 = vmatpush.msrb.mxu0 %v2355_v13  ;;  %2103 = vset.pattern.permute.xlu1 %v2170_v46 }
  0x38   : > { %806 = vmatpush.msrb.mxu2 %v2521_v37  ;;  %712 = vmatmul.f32.gmra.mxu1 %v654_v49  ;;  %v2017_v49 = vld [vmem:[%s2444_s28 + $0x60] sm:$0xff] }
  0x39   : > { %829 = vmatpush.msrb.mxu0 %v2380_v16  ;;  %745 = vperm.xlu1 %2103, %v741_v50  }
  0x3a   : > { %807 = vmatpush.msrb.mxu2 %v2535_v39  ;;  %2104 = vset.pattern.permute.xlu2 %v2170_v46 }
  0x3b   : > { %830 = vmatpush.msrb.mxu0 %v2399_v19  ;;  %851 = vperm.xlu0 %2102, %v2008_v51  }
  0x3c   : > { %808 = vmatpush.msrb.mxu2 %v2555_v43  ;;  %2014 = vmatpush.msk.msrb.mxu3 %vm866_vm2, %v756_v60 }
  0x3d   : > { %809 = vmatmul.f32.vlgmr.msrb.gmra.mxu2 %v1999_v52  ;;  %831 = vmatpush.msrb.mxu0 %v2419_v22 }
  0x3e   : > { %2005 = vmatmul.msk.f32.vlgmr.msrb.gmra.mxu0 %vm659_vm1, %v2000_v53  ;;  %2023 = vmatpush.msk.msra.mxu2 %vm666_vm0, %v2277_v1 }
  0x3f   : > { %789 = vmatmul.f32.gmra.mxu3 %v2001_v54  ;;  %938 = vmatpush.msra.mxu0 %v2282_v2 }
  0x40   : > { %993 = vmatpush.msra.mxu2 %v2287_v3  ;;  %917 = vmatpush.msrb.mxu3 %v755_v61 }
  0x41   : > { %939 = vmatpush.msra.mxu0 %v2295_v4  ;;  %750 = vperm.xlu1 %2103, %v742_v55  }
  0x42   : > { %994 = vmatpush.msra.mxu2 %v2306_v6  ;;  %2011 = vmatpush.msk.msrb.mxu1 %vm866_vm2, %v2010_v62 }
  0x43   : > { %940 = vmatpush.msra.mxu0 %v2311_v7  ;;  %1150 = vperm.xlu0 %2102, %v2042_v56  }
  0x44   : > { %995 = vmatpush.msra.mxu2 %v2336_v10  ;;  %885 = vmatpush.msrb.mxu1 %v2009_v63 }
  0x45   : > { %812 = vmatmul.f32.gmra.mxu2 %v2002_v57  ;;  %941 = vmatpush.msra.mxu0 %v2341_v11 }
  0x46   : > { %2006 = vmatmul.msk.f32.gmra.mxu0 %vm659_vm1, %v2003_v58  ;;  %996 = vmatpush.msra.mxu2 %v2355_v13  ;;  %v2043_v58 = vld [vmem:[%s2564_s20 + $0x38] sm:$0x3] }
  0x47   : > { %942 = vmatpush.msra.mxu0 %v2360_v14  ;;  %961 = vmatpush.msra.mxu1 %v2300_v5 }
  0x48   : > { %997 = vmatpush.msra.mxu2 %v2380_v16 }
  0x49   : > { %943 = vmatpush.msra.mxu0 %v2385_v17  ;;  %962 = vmatpush.msra.mxu1 %v2316_v8 }
  0x4a   : > { %998 = vmatpush.msra.mxu2 %v2399_v19  ;;  %1155 = vperm.xlu1 %2103, %v2043_v58   ;;  %v2038_v58 = vld [vmem:[%s2444_s28 + $0xb8] sm:$0x3] }
  0x4b   : > { %944 = vmatpush.msra.mxu0 %v2404_v20  ;;  %1291 = vperm.xlu0 %2102, %v2059_v59   ;;  %v2022_v59 = vld [vmem:[%s2444_s28 + $0x88] sm:$0x3] }
  0x4c   : > { %999 = vmatpush.msra.mxu2 %v2419_v22  ;;  %963 = vmatpush.msra.mxu1 %v2330_v9 }
  0x4d   : > { %945 = vmatpush.msra.mxu0 %v2424_v23  ;;  %2024 = vmatmul.msk.f32.vlgmr.msra.gmra.mxu2 %vm659_vm1, %v2019_v48  ;;  %v2036_v48 = vld [vmem:[%s2444_s28 + $0xa8] sm:$0x3] }
  0x4e   : > { %1074 = vmatpush.msrb.mxu2 %v2282_v2  ;;  %964 = vmatpush.msra.mxu1 %v2349_v12 }
  0x4f   : > { %946 = vmatpush.msra.mxu0 %v2438_v25 }
  0x50   : > { %1075 = vmatpush.msrb.mxu2 %v2295_v4  ;;  %965 = vmatpush.msra.mxu1 %v2374_v15 }
  0x51   : > { %947 = vmatpush.msra.mxu0 %v2458_v27 }
  0x52   : > { %1076 = vmatpush.msrb.mxu2 %v2311_v7  ;;  %966 = vmatpush.msra.mxu1 %v2393_v18 }
  0x53   : > { %948 = vmatpush.msra.mxu0 %v2463_v28 }
  0x54   : > { %1077 = vmatpush.msrb.mxu2 %v2341_v11  ;;  %967 = vmatpush.msra.mxu1 %v2413_v21 }
  0x55   : > { %949 = vmatpush.msra.mxu0 %v2487_v32  ;;  %2025 = vmatmul.msk.f32.gmra.mxu2 %vm659_vm1, %v2022_v59 }
  0x56   : > { %1078 = vmatpush.msrb.mxu2 %v2360_v14  ;;  %968 = vmatpush.msra.mxu1 %v2432_v24 }
  0x57   : > { %950 = vmatpush.msra.mxu0 %v2501_v34 }
  0x58   : > { %1079 = vmatpush.msrb.mxu2 %v2385_v17  ;;  %969 = vmatpush.msra.mxu1 %v2451_v26 }
  0x59   : > { %951 = vmatpush.msra.mxu0 %v2515_v36 }
  0x5a   : > { %1080 = vmatpush.msrb.mxu2 %v2404_v20  ;;  %970 = vmatpush.msra.mxu1 %v2469_v29 }
  0x5b   : > { %952 = vmatpush.msra.mxu0 %v2529_v38 }
  0x5c   : > { %1081 = vmatpush.msrb.mxu2 %v2424_v23  ;;  %971 = vmatpush.msra.mxu1 %v2479_v31 }
  0x5d   : > { %953 = vmatpush.msra.mxu0 %v2543_v40 }
  0x5e   : > { %1082 = vmatpush.msrb.mxu2 %v2438_v25  ;;  %972 = vmatpush.msra.mxu1 %v2493_v33 }
  0x5f   : > { %2039 = vmatpush.msk.msrb.mxu0 %vm666_vm0, %v2277_v1 }
  0x60   : > { %1083 = vmatpush.msrb.mxu2 %v2458_v27  ;;  %973 = vmatpush.msra.mxu1 %v2507_v35 }
  0x61   : > { %1129 = vmatpush.msrb.mxu0 %v2287_v3 }
  0x62   : > { %1084 = vmatpush.msrb.mxu2 %v2463_v28  ;;  %954 = vmatmul.f32.vlgmr.msra.gmra.mxu0 %v2017_v49 }
  0x63   : > { %1130 = vmatpush.msrb.mxu0 %v2306_v6  ;;  %974 = vmatpush.msra.mxu1 %v2521_v37 }
  0x64   : > { %1085 = vmatpush.msrb.mxu2 %v2487_v32 }
  0x65   : > { %1131 = vmatpush.msrb.mxu0 %v2336_v10  ;;  %975 = vmatpush.msra.mxu1 %v2535_v39 }
  0x66   : > { %1086 = vmatpush.msrb.mxu2 %v2501_v34 }
  0x67   : > { %1132 = vmatpush.msrb.mxu0 %v2355_v13  ;;  %976 = vmatpush.msra.mxu1 %v2555_v43 }
  0x68   : > { %1087 = vmatpush.msrb.mxu2 %v2515_v36 }
  0x69   : > { %1133 = vmatpush.msrb.mxu0 %v2380_v16 }
  0x6a   : > { %1088 = vmatpush.msrb.mxu2 %v2529_v38 }
  0x6b   : > { %1134 = vmatpush.msrb.mxu0 %v2399_v19 }
  0x6c   : > { %1089 = vmatpush.msrb.mxu2 %v2543_v40 }
  0x6d   : > { %1135 = vmatpush.msrb.mxu0 %v2419_v22 }
  0x6e   : > { %2055 = vmatpush.msk.msra.mxu2 %vm666_vm0, %v2277_v1 }
  0x6f   : > { %1210 = vmatpush.msra.mxu0 %v2282_v2  ;;  %v2020_v2 = vld [vmem:[%s2444_s28 + $0x78] sm:$0x3] }
  0x70   : > { %1265 = vmatpush.msra.mxu2 %v2287_v3  ;;  %957 = vmatmul.f32.gmra.mxu0 %v2020_v2 }
  0x71   : > { %1211 = vmatpush.msra.mxu0 %v2295_v4 }
  0x72   : > { %1266 = vmatpush.msra.mxu2 %v2306_v6 }
  0x73   : > { %1212 = vmatpush.msra.mxu0 %v2311_v7 }
  0x74   : > { %1267 = vmatpush.msra.mxu2 %v2336_v10 }
  0x75   : > { %1213 = vmatpush.msra.mxu0 %v2341_v11 }
  0x76   : > { %1268 = vmatpush.msra.mxu2 %v2355_v13  ;;  %v2026_v13 = vld [vmem:[%s2564_s20 + $0x20] sm:$0xff] }
  0x77   : > { %1214 = vmatpush.msra.mxu0 %v2360_v14  ;;  %1014 = vperm.xlu2 %2104, %v2026_v13   ;;  %v2037_v13 = vld [vmem:[%s2444_s28 + $0xb0] sm:$0x3] }
  0x78   : > { %1269 = vmatpush.msra.mxu2 %v2380_v16 }
  0x79   : > { %1215 = vmatpush.msra.mxu0 %v2385_v17  ;;  %v2027_v17 = vld [vmem:[%s2564_s20 + $0x28] sm:$0x3] }
  0x7a   : > { %1270 = vmatpush.msra.mxu2 %v2399_v19 }
  0x7b   : > { %1216 = vmatpush.msra.mxu0 %v2404_v20 }
  0x7c   : > { %1271 = vmatpush.msra.mxu2 %v2419_v22 }
  0x7d   : > { %1217 = vmatpush.msra.mxu0 %v2424_v23 }
  0x7f   : > { %1218 = vmatpush.msra.mxu0 %v2438_v25  ;;  %1019 = vperm.xlu2 %2104, %v2027_v17  }
  0x81   : > { %1219 = vmatpush.msra.mxu0 %v2458_v27  ;;  %v2018_v27 = vld [vmem:[%s2444_s28 + $0x68] sm:$0xff] }
  0x83   : > { %1220 = vmatpush.msra.mxu0 %v2463_v28  ;;  %v2021_v28 = vld [vmem:[%s2444_s28 + $0x80] sm:$0x3] }
  0x85   : > { %1221 = vmatpush.msra.mxu0 %v2487_v32  ;;  %v2029_v32 = vld [vmem:[%s2971_s4 + $0x28] sm:$0x3] }
  0x86   : > { %2030 = vmatpush.msk.msra.mxu3 %vm866_vm2, %v2029_v32  ;;  %v2060_v32 = vld [vmem:[%s2971_s4 + $0x40] sm:$0xff] }
  0x87   : > { %1222 = vmatpush.msra.mxu0 %v2501_v34  ;;  %v2028_v34 = vld [vmem:[%s2971_s4 + $0x20] sm:$0xff] }
  0x88   : > { %1051 = vmatpush.msra.mxu3 %v2028_v34 }
  0x89   : > { %1223 = vmatpush.msra.mxu0 %v2515_v36 }
  0x8b   : > { %1224 = vmatpush.msra.mxu0 %v2529_v38 }
  0x8d   : > { %1225 = vmatpush.msra.mxu0 %v2543_v40 }
  0xa4   : > { %v733_v41 = vpop.f32.mrf.mxu2 }
  0xa5   : > { %v847_v62 = vpop.permute.xlu0 %846 }
  0xab   : > { %v687_v30 = vpop.f32.mrf.mxu0  ;;  %v746_v46 = vpop.permute.xlu1 %745 }
  0xac   : > { %v688_v42 = vadd.f32 %v2676_v0, %v687_v30 }
  0xad   : > { %v710_v44 = vpop.f32.mrf.mxu1  ;;  %v852_v25 = vpop.permute.xlu0 %851 }
  0xae   : > { %v711_v45 = vadd.f32 %v710_v44, %v688_v42  ;;  %v736_v55 = vpop.f32.mrf.mxu2  ;;  %v2058_v44 = vld [vmem:[%s2564_s20 + $0x40] sm:$0xff]  ;;  %s2842_s20 = scalar_lea.vmem %s2983_s16, %s2087_s18 }
  0xaf   : > { %1286 = vperm.xlu2 %2104, %v2058_v44   ;;  %v2050_v44 = vld [vmem:[%s2444_s28 + $0xc8] sm:$0xff] }
  0xb0   : > { %v734_v47 = vadd.f32 %v733_v41, %v711_v45  ;;  %v2033_v45 = vld [vmem:[%s2444_s28 + $0x90] sm:$0xff] }
  0xb1   : > { %1090 = vmatmul.f32.vlgmr.msrb.gmra.mxu2 %v2033_v45  ;;  %v1342_v45 = vld [vmem:[%s2973_s6 + $0x8] sm:$0xff] }
  0xb2   : > { %v739_v50 = vmax.f32 %v734_v47, 0.0 }
  0xb3   : > { %v690_v51 = vpop.f32.mrf.mxu0  ;;  %v751_v57 = vpop.permute.xlu1 %750 }
  0xb4   : > { %v753_v52 = vmul.f32 %v746_v46, %v739_v50  ;;  %v691_v53 = vadd.f32 %v2676_v0, %v690_v51 }
  0xb5   : > { %v713_v54 = vpop.f32.mrf.mxu1  ;;  %v1151_v17 = vpop.permute.xlu0 %1150 }
  0xb6   : > { %v714_v56 = vadd.f32 %v713_v54, %v691_v53  ;;  %2015 = vmatmul.msk.f32.vlgmr.msrb.gmra.mxu3 %vm859_vm3, %v753_v52  ;;  %v2035_v52 = vld [vmem:[%s2444_s28 + $0xa0] sm:$0xff] }
  0xb7   : > { %1097 = vmatpush.msrb.mxu3 %v2300_v5  ;;  %2040 = vmatmul.msk.f32.vlgmr.msrb.gmra.mxu0 %vm659_vm1, %v2035_v52 }
  0xb8   : > { %v737_v1 = vadd.f32 %v736_v55, %v714_v56  ;;  %v787_v60 = vpop.f32.mrf.mxu3 }
  0xb9   : > { %v788_v6 = vadd.f32 %v2676_v0, %v787_v60  ;;  %1098 = vmatpush.msrb.mxu3 %v2316_v8  ;;  %1093 = vmatmul.f32.gmra.mxu2 %v2036_v48 }
  0xba   : > { %v740_v3 = vmax.f32 %v737_v1, 0.0 }
  0xbb   : > { %v833_v7 = vpop.f32.mrf.mxu0  ;;  %1099 = vmatpush.msrb.mxu3 %v2330_v9 }
  0xbc   : > { %v754_v4 = vmul.f32 %v751_v57, %v740_v3 }
  0xbd   : > { %1100 = vmatpush.msrb.mxu3 %v2349_v12 }
  0xbe   : > { %2016 = vmatmul.msk.f32.gmra.mxu3 %vm859_vm3, %v754_v4 }
  0xbf   : > { %1101 = vmatpush.msrb.mxu3 %v2374_v15  ;;  %2041 = vmatmul.msk.f32.gmra.mxu0 %vm659_vm1, %v2038_v58 }
  0xc0   : > { %v810_v10 = vpop.f32.mrf.mxu2 }
  0xc1   : > { %v811_v61 = vadd.f32 %v810_v10, %v788_v6  ;;  %1102 = vmatpush.msrb.mxu3 %v2393_v18 }
  0xc2   : > { %v790_v11 = vpop.f32.mrf.mxu3 }
  0xc3   : > { %v834_v16 = vadd.f32 %v833_v7, %v811_v61  ;;  %v791_v14 = vadd.f32 %v2676_v0, %v790_v11  ;;  %v836_v41 = vpop.f32.mrf.mxu0  ;;  %1103 = vmatpush.msrb.mxu3 %v2413_v21  ;;  %v2034_v61 = vld [vmem:[%s2444_s28 + $0x98] sm:$0xff] }
  0xc4   : > { %v2045_v11 = vld [vmem:[%s2971_s4 + $0x38] sm:$0x3] }
  0xc5   : > { %v839_v63 = vmax.f32 %v834_v16, 0.0  ;;  %1104 = vmatpush.msrb.mxu3 %v2432_v24  ;;  %v2044_v16 = vld [vmem:[%s2971_s4 + $0x30] sm:$0xff] }
  0xc7   : > { %v854_v19 = vmul.f32 %v847_v62, %v839_v63  ;;  %1105 = vmatpush.msrb.mxu3 %v2451_v26 }
  0xc8   : > { %v813_v30 = vpop.f32.mrf.mxu2 }
  0xc9   : > { %v814_v22 = vadd.f32 %v813_v30, %v791_v14  ;;  %2012 = vmatmul.msk.f32.vlgmr.msrb.gmra.mxu1 %vm859_vm3, %v854_v19  ;;  %1106 = vmatpush.msrb.mxu3 %v2469_v29 }
  0xca   : > { %2046 = vmatpush.msk.msrb.mxu1 %vm866_vm2, %v2045_v11  ;;  %v1385_v11 = vld [vmem:[%s2837_s19] sm:$0x3] }
  0xcb   : > { %v837_v20 = vadd.f32 %v836_v41, %v814_v22  ;;  %1107 = vmatpush.msrb.mxu3 %v2479_v31 }
  0xcc   : > { %1187 = vmatpush.msrb.mxu1 %v2044_v16  ;;  %v1386_v16 = vld [vmem:[%s2842_s20] sm:$0x3] }
  0xcd   : > { %v840_v23 = vmax.f32 %v837_v20, 0.0  ;;  %1108 = vmatpush.msrb.mxu3 %v2493_v33  ;;  %1433 = vrot.lane.b32.xlu2 %v1386_v16, %s2171_s29 }
  0xcf   : > { %v855_v42 = vmul.f32 %v852_v25, %v840_v23  ;;  %1109 = vmatpush.msrb.mxu3 %v2507_v35  ;;  %v1156_v25 = vpop.permute.xlu1 %1155 }
  0xd0   : > { %v1001_v50 = vpop.f32.mrf.mxu2 }
  0xd1   : > { %2013 = vmatmul.msk.f32.gmra.mxu1 %vm859_vm3, %v855_v42  ;;  %1110 = vmatpush.msrb.mxu3 %v2521_v37  ;;  %v1015_v56 = vpop.permute.xlu2 %1014 }
  0xd3   : > { %1111 = vmatpush.msrb.mxu3 %v2535_v39 }
  0xd5   : > { %1112 = vmatpush.msrb.mxu3 %v2555_v43 }
  0xd8   : > { %v1004_v3 = vpop.f32.mrf.mxu2 }
  0xd9   : > { %977 = vmatmul.f32.vlgmr.msra.gmra.mxu1 %v2018_v27  ;;  %v1020_v7 = vpop.permute.xlu2 %1019  ;;  %v2053_v27 = vld [vmem:[%s2444_s28 + $0xe0] sm:$0x3] }
  0xda   : > { %1233 = vmatpush.msra.mxu1 %v2300_v5 }
  0xdc   : > { %1234 = vmatpush.msra.mxu1 %v2316_v8 }
  0xde   : > { %1235 = vmatpush.msra.mxu1 %v2330_v9  ;;  %v2051_v9 = vld [vmem:[%s2444_s28 + $0xd0] sm:$0xff] }
  0xdf   : > { %v955_v47 = vpop.f32.mrf.mxu0  ;;  %2056 = vmatmul.msk.f32.vlgmr.msra.gmra.mxu2 %vm659_vm1, %v2051_v9 }
  0xe0   : > { %v956_v49 = vadd.f32 %v2676_v0, %v955_v47  ;;  %1236 = vmatpush.msra.mxu1 %v2349_v12  ;;  %v2049_v12 = vld [vmem:[%s2444_s28 + $0xc0] sm:$0xff] }
  0xe1   : > { %980 = vmatmul.f32.gmra.mxu1 %v2021_v28  ;;  %1226 = vmatmul.f32.vlgmr.msra.gmra.mxu0 %v2049_v12  ;;  %v2061_v28 = vld [vmem:[%s2971_s4 + $0x48] sm:$0x3] }
  0xe2   : > { %1237 = vmatpush.msra.mxu1 %v2374_v15 }
  0xe4   : > { %1238 = vmatpush.msra.mxu1 %v2393_v18 }
  0xe6   : > { %1239 = vmatpush.msra.mxu1 %v2413_v21 }
  0xe8   : > { %1240 = vmatpush.msra.mxu1 %v2432_v24 }
  0xea   : > { %1241 = vmatpush.msra.mxu1 %v2451_v26  ;;  %v2054_v26 = vld [vmem:[%s2444_s28 + $0xe8] sm:$0x3] }
  0xeb   : > { %2057 = vmatmul.msk.f32.gmra.mxu2 %vm659_vm1, %v2054_v26  ;;  %v2107_v26 = vld [vmem:[%s2975_s8] ss:$0 sm:$0xff] }
  0xec   : > { %1242 = vmatpush.msra.mxu1 %v2469_v29  ;;  %v2052_v29 = vld [vmem:[%s2444_s28 + $0xd8] sm:$0x3] }
  0xed   : > { %v958_v54 = vpop.f32.mrf.mxu0  ;;  %1229 = vmatmul.f32.gmra.mxu0 %v2052_v29 }
  0xee   : > { %v959_v57 = vadd.f32 %v2676_v0, %v958_v54  ;;  %1243 = vmatpush.msra.mxu1 %v2479_v31 }
  0xf0   : > { %1244 = vmatpush.msra.mxu1 %v2493_v33 }
  0xf2   : > { %1245 = vmatpush.msra.mxu1 %v2507_v35 }
  0xf4   : > { %1246 = vmatpush.msra.mxu1 %v2521_v37 }
  0xf6   : > { %1247 = vmatpush.msra.mxu1 %v2535_v39 }
  0xf8   : > { %1248 = vmatpush.msra.mxu1 %v2555_v43 }
 0x134   : > { %v1091_v21 = vpop.f32.mrf.mxu2  ;;  %v1137_v33 = vpop.f32.mrf.mxu0 }
 0x135   : > { %v1092_v31 = vadd.f32 %v2676_v0, %v1091_v21 }
 0x139   : > { %v919_v36 = vpop.f32.mrf.mxu3 }
 0x13c   : > { %v1094_v37 = vpop.f32.mrf.mxu2  ;;  %v1140_v41 = vpop.f32.mrf.mxu0 }
 0x13d   : > { %v1095_v19 = vadd.f32 %v2676_v0, %v1094_v37 }
 0x141   : > { %v922_v62 = vpop.f32.mrf.mxu3 }
 0x146   : > { %v887_v38 = vpop.f32.mrf.mxu1 }
 0x147   : > { %v920_v40 = vadd.f32 %v919_v36, %v887_v38  ;;  %v1344_v38 = vld [vmem:[%s2973_s6 + $0x18] sm:$0xff] }
 0x148   : > { %1368 = vmatpush.msrb.mxu2 %v1344_v38 }
 0x14e   : > { %v890_v46 = vpop.f32.mrf.mxu1 }
 0x14f   : > { %v923_v15 = vadd.f32 %v922_v62, %v890_v46  ;;  %v2106_v62 = vld [vmem:[%s2972_s5] ss:$0 sm:$0xff] }
 0x156   : > { %v978_v51 = vpop.f32.mrf.mxu1 }
 0x157   : > { %v979_v53 = vadd.f32 %v978_v51, %v956_v49 }
 0x159   : > { %v1002_v55 = vadd.f32 %v1001_v50, %v979_v53 }
 0x15b   : > { %v1007_v1 = vmax.f32 %v1002_v55, 0.0 }
 0x15d   : > { %v1022_v59 = vmul.f32 %v1015_v56, %v1007_v1  ;;  %v1287_v1 = vpop.permute.xlu2 %1286 }
 0x15e   : > { %v981_v2 = vpop.f32.mrf.mxu1  ;;  %v1227_v47 = vpop.f32.mrf.mxu0 }
 0x15f   : > { %v982_v60 = vadd.f32 %v981_v2, %v959_v57  ;;  %2031 = vmatmul.msk.f32.vlgmr.msra.gmra.mxu3 %vm859_vm3, %v1022_v59  ;;  %v1228_v49 = vadd.f32 %v2676_v0, %v1227_v47 }
 0x160   : > { %2062 = vmatpush.msk.msra.mxu3 %vm866_vm2, %v2061_v28 }
 0x161   : > { %v1005_v4 = vadd.f32 %v1004_v3, %v982_v60 }
 0x162   : > { %1323 = vmatpush.msra.mxu3 %v2060_v32  ;;  %v1273_v50 = vpop.f32.mrf.mxu2 }
 0x163   : > { %v1008_v6 = vmax.f32 %v1005_v4, 0.0  ;;  %v1292_v4 = vpop.permute.xlu0 %1291 }
 0x165   : > { %v1023_v10 = vmul.f32 %v1020_v7, %v1008_v6  ;;  %v1384_v7 = vld [vmem:[%s2974_s7 + $0x18] sm:$0xff] }
 0x166   : > { %1535 = vmatpush.msrb.mxu0 %v1384_v7 }
 0x167   : > { %2032 = vmatmul.msk.f32.gmra.mxu3 %vm859_vm3, %v1023_v10  ;;  %v1383_v10 = vld [vmem:[%s2974_s7 + $0x10] sm:$0xff] }
 0x168   : > { %1536 = vmatpush.msrb.mxu0 %v1383_v10 }
 0x16a   : > { %v1230_v53 = vpop.f32.mrf.mxu0 }
 0x16b   : > { %v1231_v56 = vadd.f32 %v2676_v0, %v1230_v53  ;;  %v1341_v0 = vld [vmem:[%s2973_s6] sm:$0xff] }
 0x16e   : > { %v1276_v59 = vpop.f32.mrf.mxu2 }
 0x16f   : > { %1113 = vmatmul.f32.vlgmr.msrb.gmra.mxu3 %v2034_v61  ;;  %v1382_v61 = vld [vmem:[%s2974_s7 + $0x8] sm:$0xff] }
 0x170   : > { %1403 = vmatpush.msrb.mxu3 %v1384_v7  ;;  %1537 = vmatpush.msrb.mxu0 %v1382_v61 }
 0x172   : > { %1404 = vmatpush.msrb.mxu3 %v1383_v10 }
 0x174   : > { %1405 = vmatpush.msrb.mxu3 %v1382_v61 }
 0x177   : > { %1116 = vmatmul.f32.gmra.mxu3 %v2037_v13  ;;  %v1381_v13 = vld [vmem:[%s2974_s7] sm:$0xff] }
 0x178   : > { %1406 = vmatpush.msrb.mxu3 %v1381_v13  ;;  %1538 = vmatpush.msrb.mxu0 %v1381_v13 }
 0x1e2   : > { %v1053_v5 = vpop.f32.mrf.mxu3 }
 0x1e3   : > { %v1059_v8 = vadd.f32 %v1053_v5, %v920_v40  ;;  %v1343_v40 = vld [vmem:[%s2973_s6 + $0x10] sm:$0xff] }
 0x1e4   : > { %1369 = vmatpush.msrb.mxu2 %v1343_v40 }
 0x1e6   : > { %1370 = vmatpush.msrb.mxu2 %v1342_v45 }
 0x1e8   : > { %1371 = vmatpush.msrb.mxu2 %v1341_v0 }
 0x1ea   : > { %v1056_v18 = vpop.f32.mrf.mxu3  ;;  %1663 = vmatpush.msra.mxu2 %v1384_v7 }
 0x1eb   : > { %v1060_v24 = vadd.f32 %v1056_v18, %v923_v15 }
 0x1ec   : > { %1664 = vmatpush.msra.mxu2 %v1383_v10 }
 0x1ee   : > { %1665 = vmatpush.msra.mxu2 %v1382_v61 }
 0x1f0   : > { %1666 = vmatpush.msra.mxu2 %v1381_v13 }
 0x1f2   : > { %v1114_v35 = vpop.f32.mrf.mxu3 }
 0x1f3   : > { %v1115_v63 = vadd.f32 %v1114_v35, %v1092_v31 }
 0x1f5   : > { %v1138_v14 = vadd.f32 %v1137_v33, %v1115_v63 }
 0x1f7   : > { %v1143_v39 = vmax.f32 %v1138_v14, 0.0 }
 0x1f9   : > { %v1158_v43 = vmul.f32 %v1151_v17, %v1143_v39 }
 0x1fa   : > { %v1117_v30 = vpop.f32.mrf.mxu3 }
 0x1fb   : > { %v1118_v22 = vadd.f32 %v1117_v30, %v1095_v19  ;;  %2047 = vmatmul.msk.f32.vlgmr.msrb.gmra.mxu1 %vm859_vm3, %v1158_v43 }
 0x1fc   : > { %1599 = vmatpush.msrb.mxu1 %v1384_v7 }
 0x1fd   : > { %v1141_v20 = vadd.f32 %v1140_v41, %v1118_v22 }
 0x1fe   : > { %1600 = vmatpush.msrb.mxu1 %v1383_v10 }
 0x1ff   : > { %v1144_v23 = vmax.f32 %v1141_v20, 0.0 }
 0x200   : > { %1601 = vmatpush.msrb.mxu1 %v1382_v61 }
 0x201   : > { %v1159_v42 = vmul.f32 %v1156_v25, %v1144_v23 }
 0x202   : > { %1602 = vmatpush.msrb.mxu1 %v1381_v13 }
 0x203   : > { %2048 = vmatmul.msk.f32.gmra.mxu1 %vm859_vm3, %v1159_v42 }
 0x20b   : > { %1249 = vmatmul.f32.vlgmr.msra.gmra.mxu1 %v2050_v44 }
 0x213   : > { %1252 = vmatmul.f32.gmra.mxu1 %v2053_v27 }
 0x278   : > { %v1189_v34 = vpop.f32.mrf.mxu1 }
 0x279   : > { %v2809_v36 = vadd.f32 %v1189_v34, %v1059_v8 }
 0x280   : > { %v1192_v46 = vpop.f32.mrf.mxu1 }
 0x281   : > { %v1196_v48 = vadd.f32 %v1192_v46, %v1060_v24 }
 0x288   : > { %v1250_v51 = vpop.f32.mrf.mxu1 }
 0x289   : > { %v1251_v52 = vadd.f32 %v1250_v51, %v1228_v49 }
 0x28b   : > { %v1274_v54 = vadd.f32 %v1273_v50, %v1251_v52 }
 0x28d   : > { %v1279_v55 = vmax.f32 %v1274_v54, 0.0 }
 0x28f   : > { %v1294_v57 = vmul.f32 %v1287_v1, %v1279_v55 }
 0x290   : > { %v1253_v58 = vpop.f32.mrf.mxu1 }
 0x291   : > { %v1254_v2 = vadd.f32 %v1253_v58, %v1231_v56  ;;  %2063 = vmatmul.msk.f32.vlgmr.msra.gmra.mxu3 %vm859_vm3, %v1294_v57 }
 0x292   : > { %1471 = vmatpush.msra.mxu3 %v1384_v7 }
 0x293   : > { %v1277_v3 = vadd.f32 %v1276_v59, %v1254_v2 }
 0x294   : > { %1472 = vmatpush.msra.mxu3 %v1383_v10 }
 0x295   : > { %v1280_v60 = vmax.f32 %v1277_v3, 0.0 }
 0x296   : > { %1473 = vmatpush.msra.mxu3 %v1382_v61 }
 0x297   : > { %v1295_v6 = vmul.f32 %v1292_v4, %v1280_v60 }
 0x298   : > { %1474 = vmatpush.msra.mxu3 %v1381_v13 }
 0x299   : > { %2064 = vmatmul.msk.f32.gmra.mxu3 %vm859_vm3, %v1295_v6 }
 0x2a1   : > { %2067 = vmatmul.msk.f32.vlgmr.msrb.gmra.mxu3 %vm1349_vm4, %v1385_v11 }
 0x314   : > { %v1325_v5 = vpop.f32.mrf.mxu3 }
 0x315   : > { %v1331_v8 = vadd.f32 %v1325_v5, %v2809_v36  ;;  %v1434_v36 = vpop.permute.xlu2 %1433  ;;  %v1717_v5 = vld [vmem:[%s2977_s10 + $0x10] sm:$0xff] }
 0x317   : > { %v1337_v9 = vadd.f32 %v2106_v62, %v1331_v8  ;;  %v1716_v8 = vld [vmem:[%s2977_s10 + $0x8] sm:$0xff] }
 0x319   : > { %v1339_v12 = vmax.f32 %v1337_v9, 0.0 }
 0x31b   : > { %2065 = vmatmul.msk.f32.vlgmr.msrb.gmra.mxu2 %vm1349_vm4, %v1339_v12 }
 0x31c   : > { %v1328_v15 = vpop.f32.mrf.mxu3 }
 0x31d   : > { %v1332_v18 = vadd.f32 %v1328_v15, %v1196_v48  ;;  %v1715_v15 = vld [vmem:[%s2977_s10] sm:$0xff] }
 0x31f   : > { %v2859_v21 = vadd.f32 %v2106_v62, %v1332_v18  ;;  %v1718_v62 = vld [vmem:[%s2977_s10 + $0x18] sm:$0xff] }
 0x320   : > { %1734 = vmatpush.msrb.mxu3 %v1718_v62  ;;  %v1712_v18 = vld [vmem:[%s2976_s9 + $0x18] sm:$0xff] }
 0x321   : > { %v1340_v24 = vmax.f32 %v2859_v21, 0.0  ;;  %1754 = vmatpush.msra.mxu0 %v1712_v18 }
 0x322   : > { %1735 = vmatpush.msrb.mxu3 %v1717_v5 }
 0x323   : > { %2066 = vmatmul.msk.f32.gmra.mxu2 %vm1349_vm4, %v1340_v24 }
 0x324   : > { %v1408_v35 = vpop.f32.mrf.mxu3  ;;  %1736 = vmatpush.msrb.mxu3 %v1716_v8 }
 0x326   : > { %1737 = vmatpush.msrb.mxu3 %v1715_v15 }
 0x39e   : > { %v1373_v29 = vpop.f32.mrf.mxu2 }
 0x39f   : > { %v1374_v31 = vadd.f32 %v2107_v26, %v1373_v29  ;;  %v1711_v29 = vld [vmem:[%s2976_s9 + $0x10] sm:$0xff] }
 0x3a0   : > { %1755 = vmatpush.msra.mxu0 %v1711_v29 }
 0x3a1   : > { %1379 = vst [vmem:[#allocation2] sm:$0xff] %v1374_v31  ;;  %v1710_v31 = vld [vmem:[%s2976_s9 + $0x8] sm:$0xff] }
 0x3a2   : > { %1756 = vmatpush.msra.mxu0 %v1710_v31 }
 0x3a6   : > { %v1376_v33 = vpop.f32.mrf.mxu2 }
 0x3a7   : > { %v1377_v63 = vadd.f32 %v2107_v26, %v1376_v33  ;;  %v2077_v26 = vld [vmem:[%s2837_s19 + $0x2] sm:$0x3] }
 0x3a8   : > { %v1387_v37 = vld [vmem:[#allocation2] sm:$0x3]  ;;  %v1453_v50 = vld [vmem:[#allocation2 + $0x2] sm:$0x3] }
 0x3a9   : > { %1380 = vst [vmem:[#allocation2 + $0x8] sm:$0x3] %v1377_v63  ;;  %v1411_v14 = vadd.f32 %v1408_v35, %v1387_v37  ;;  %v1709_v33 = vld [vmem:[%s2976_s9] sm:$0xff] }
 0x3aa   : > { %1757 = vmatpush.msra.mxu0 %v1709_v33  ;;  %v1517_v63 = vld [vmem:[#allocation2 + $0x4] sm:$0x3] }
 0x3ab   : > { %2110 = vtanh.f32 %v1411_v14  ;;  %v2068_v19 = vmul.f32 -1.442695, %v1411_v14 }
 0x3ad   : > { %2112 = vpow2.f32 %v2068_v19 }
 0x3b1   : > { %v2111_v39 = vpop.eup %2110 }
 0x3b2   : > { %1438 = vrot.lane.b32.xlu1 %v2111_v39, %s2172_s14 }
 0x3b3   : > { %v2113_v17 = vpop.eup %2112 }
 0x3b4   : > { %v1415_v43 = vadd.f32 1.0, %v2113_v17 }
 0x3b6   : > { %2114 = vrcp.f32 %v1415_v43  ;;  %v1427_v25 = vand.u32 2147483648, %v1415_v43  ;;  %vm1421_vm6 = vweird.f32 %v1415_v43  ;;  %v1425_v42 = vand.u32 2147483647, %v1415_v43 }
 0x3b8   : > { %v1428_v27 = vor.u32 1.1754944e-38, %v1427_v25  ;;  %vm1426_vm8 = vcmp.eq.f32.partialorder %v1425_v42, 8.507059e+37 }
 0x3bc   : > { %v2115_v30 = vpop.eup %2114 }
 0x3bd   : > { %v1417_v41 = vmul.f32 %v2115_v30, %v1415_v43  ;;  %vm1422_vm5 = vweird.f32 %v2115_v30 }
 0x3be   : > { %vm1423_vm7 = vmor %vm1421_vm6, %vm1422_vm5 }
 0x3bf   : > { %v1418_v22 = vsub.f32 1.0, %v1417_v41 }
 0x3c1   : > { %v1419_v20 = vmul.f32 %v2115_v30, %v1418_v22 }
 0x3c3   : > { %v1420_v23 = vadd.f32 %v2115_v30, %v1419_v20 }
 0x3c5   : > { %v1424_v44 = vsel %vm1423_vm7, %v2115_v30, %v1420_v23 }
 0x3c6   : > { %v1429_v28 = vsel %vm1426_vm8, %v1428_v27, %v1424_v44 }
 0x3c7   : > { %v1436_v38 = vmul.f32 %v1434_v36, %v1429_v28 }
 0x424   : > { %v1439_v32 = vpop.permute.xlu1 %1438 }
 0x425   : > { %v1441_v34 = vmul.f32 %v1439_v32, %v1429_v28 }
 0x427   : > { %1443 = vrot.lane.b32.xlu0 %v1441_v34, %s2171_s29 }
 0x499   : > { %v1444_v40 = vpop.permute.xlu0 %1443 }
 0x49a   : > { %v1446_v45 = vadd.f32 %v1444_v40, %v1436_v38 }
 0x49c   : > { %2116 = vtanh.f32 %v1446_v45 }
 0x4a2   : > { %v2117_v46 = vpop.eup %2116 }
 0x4a3   : > { %1449 = vrot.lane.b32.xlu1 %v2117_v46, %s2172_s14 }
 0x515   : > { %v1450_v47 = vpop.permute.xlu1 %1449 }
 0x516   : > { %v1452_v48 = vmul.f32 %v1450_v47, %v1429_v28  ;;  %v1581_v47 = vld [vmem:[#allocation2 + $0x6] sm:$0x3] }
 0x518   : > { %1455 = vrot.lane.b32.xlu2 %v1452_v48, %s2171_s29 }
 0x572   : > { %v1456_v49 = vpop.permute.xlu2 %1455 }
 0x573   : > { %2069 = vmatmul.msk.f32.vlgmr.msra.gmra.mxu3 %vm1349_vm4, %v1456_v49 }
 0x57b   : > { %2078 = vmatmul.msk.f32.vlgmr.msrb.gmra.mxu3 %vm1349_vm4, %v2077_v26 }
 0x5f6   : > { %v1476_v51 = vpop.f32.mrf.mxu3 }
 0x5f7   : > { %v1479_v52 = vadd.f32 %v1476_v51, %v1453_v50 }
 0x5f9   : > { %2118 = vtanh.f32 %v1479_v52  ;;  %v2070_v54 = vmul.f32 -1.442695, %v1479_v52 }
 0x5fb   : > { %2120 = vpow2.f32 %v2070_v54 }
 0x5ff   : > { %v2119_v53 = vpop.eup %2118 }
 0x600   : > { %1502 = vrot.lane.b32.xlu0 %v2119_v53, %s2172_s14 }
 0x601   : > { %v2121_v55 = vpop.eup %2120 }
 0x602   : > { %v1483_v56 = vadd.f32 1.0, %v2121_v55 }
 0x604   : > { %2122 = vrcp.f32 %v1483_v56  ;;  %v1495_v3 = vand.u32 2147483648, %v1483_v56  ;;  %vm1489_vm10 = vweird.f32 %v1483_v56  ;;  %v1493_v60 = vand.u32 2147483647, %v1483_v56 }
 0x606   : > { %v1496_v6 = vor.u32 1.1754944e-38, %v1495_v3  ;;  %vm1494_vm12 = vcmp.eq.f32.partialorder %v1493_v60, 8.507059e+37 }
 0x60a   : > { %v2123_v1 = vpop.eup %2122 }
 0x60b   : > { %v1485_v57 = vmul.f32 %v2123_v1, %v1483_v56  ;;  %vm1490_vm9 = vweird.f32 %v2123_v1 }
 0x60c   : > { %vm1491_vm11 = vmor %vm1489_vm10, %vm1490_vm9 }
 0x60d   : > { %v1486_v58 = vsub.f32 1.0, %v1485_v57 }
 0x60f   : > { %v1487_v59 = vmul.f32 %v2123_v1, %v1486_v58 }
 0x611   : > { %v1488_v2 = vadd.f32 %v2123_v1, %v1487_v59 }
 0x613   : > { %v1492_v4 = vsel %vm1491_vm11, %v2123_v1, %v1488_v2 }
 0x614   : > { %v1497_v0 = vsel %vm1494_vm12, %v1496_v6, %v1492_v4 }
 0x615   : > { %v1500_v61 = vmul.f32 %v1497_v0, %v1446_v45 }
 0x672   : > { %v1503_v7 = vpop.permute.xlu0 %1502 }
 0x673   : > { %v1505_v10 = vmul.f32 %v1503_v7, %v1497_v0  ;;  %v1739_v7 = vpop.f32.mrf.mxu3 }
 0x675   : > { %1507 = vrot.lane.b32.xlu1 %v1505_v10, %s2171_s29 }
 0x6e7   : > { %v1508_v13 = vpop.permute.xlu1 %1507 }
 0x6e8   : > { %v1510_v11 = vadd.f32 %v1508_v13, %v1500_v61 }
 0x6ea   : > { %2124 = vtanh.f32 %v1510_v11 }
 0x6f0   : > { %v2125_v16 = vpop.eup %2124 }
 0x6f1   : > { %1513 = vrot.lane.b32.xlu2 %v2125_v16, %s2172_s14  ;;  %v2108_v16 = vld [vmem:[%s2978_s11] ss:$0 sm:$0xff] }
 0x74b   : > { %v1514_v9 = vpop.permute.xlu2 %1513 }
 0x74c   : > { %v1516_v12 = vmul.f32 %v1514_v9, %v1497_v0 }
 0x74e   : > { %1519 = vrot.lane.b32.xlu0 %v1516_v12, %s2171_s29 }
 0x7c0   : > { %v1520_v35 = vpop.permute.xlu0 %1519 }
 0x7c1   : > { %2071 = vmatmul.msk.f32.vlgmr.msrb.gmra.mxu0 %vm1349_vm4, %v1520_v35 }
 0x7c9   : > { %2079 = vmatmul.msk.f32.vlgmr.msra.gmra.mxu0 %vm1349_vm4, %v1340_v24 }
 0x83e   : > { %v1540_v37 = vpop.f32.mrf.mxu0 }
 0x83f   : > { %v1543_v14 = vadd.f32 %v1540_v37, %v1517_v63 }
 0x841   : > { %2126 = vtanh.f32 %v1543_v14  ;;  %v2072_v19 = vmul.f32 -1.442695, %v1543_v14 }
 0x843   : > { %2128 = vpow2.f32 %v2072_v19 }
 0x846   : > { %v1759_v10 = vpop.f32.mrf.mxu0 }
 0x847   : > { %v2127_v39 = vpop.eup %2126 }
 0x848   : > { %1566 = vrot.lane.b32.xlu1 %v2127_v39, %s2172_s14 }
 0x849   : > { %v2129_v17 = vpop.eup %2128 }
 0x84a   : > { %v1547_v43 = vadd.f32 1.0, %v2129_v17 }
 0x84c   : > { %2130 = vrcp.f32 %v1547_v43  ;;  %v1559_v21 = vand.u32 2147483648, %v1547_v43  ;;  %vm1553_vm14 = vweird.f32 %v1547_v43  ;;  %v1557_v24 = vand.u32 2147483647, %v1547_v43 }
 0x84e   : > { %v1560_v42 = vor.u32 1.1754944e-38, %v1559_v21  ;;  %vm1558_vm0 = vcmp.eq.f32.partialorder %v1557_v24, 8.507059e+37  ;;  %v2080_v24 = vld [vmem:[%s2842_s20 + $0x2] sm:$0x3] }
 0x852   : > { %v2131_v30 = vpop.eup %2130 }
 0x853   : > { %v1549_v41 = vmul.f32 %v2131_v30, %v1547_v43  ;;  %vm1554_vm13 = vweird.f32 %v2131_v30 }
 0x854   : > { %vm1555_vm15 = vmor %vm1553_vm14, %vm1554_vm13 }
 0x855   : > { %v1550_v22 = vsub.f32 1.0, %v1549_v41 }
 0x857   : > { %v1551_v20 = vmul.f32 %v2131_v30, %v1550_v22  ;;  %v1645_v22 = vld [vmem:[#allocation2 + $0x8] sm:$0x3] }
 0x859   : > { %v1552_v23 = vadd.f32 %v2131_v30, %v1551_v20 }
 0x85b   : > { %v1556_v25 = vsel %vm1555_vm15, %v2131_v30, %v1552_v23 }
 0x85c   : > { %v1561_v27 = vsel %vm1558_vm0, %v1560_v42, %v1556_v25  ;;  %vm1892_vm0 = vcmask 1024  }
 0x85d   : > { %v1564_v32 = vmul.f32 %v1561_v27, %v1510_v11  ;;  %v1760_v11 = vadd.f32 %v1759_v10, %v1739_v7  ;;  %v1812_v10 = vld [vmem:[%s2979_s12 + $0x10] sm:$0xff] }
 0x85f   : > { %v1766_v62 = vadd.f32 %v2108_v16, %v1760_v11 }
 0x861   : > { %v2081_v9 = vmul.f32 -1.442695, %v1766_v62 }
 0x8ba   : > { %v1567_v44 = vpop.permute.xlu1 %1566 }
 0x8bb   : > { %v1569_v28 = vmul.f32 %v1567_v44, %v1561_v27 }
 0x8bd   : > { %1571 = vrot.lane.b32.xlu2 %v1569_v28, %s2171_s29 }
 0x917   : > { %v1572_v34 = vpop.permute.xlu2 %1571 }
 0x918   : > { %v1574_v36 = vadd.f32 %v1572_v34, %v1564_v32 }
 0x91a   : > { %2132 = vtanh.f32 %v1574_v36 }
 0x920   : > { %v2133_v38 = vpop.eup %2132 }
 0x921   : > { %1577 = vrot.lane.b32.xlu0 %v2133_v38, %s2172_s14 }
 0x993   : > { %v1578_v40 = vpop.permute.xlu0 %1577 }
 0x994   : > { %v1580_v45 = vmul.f32 %v1578_v40, %v1561_v27 }
 0x996   : > { %1583 = vrot.lane.b32.xlu1 %v1580_v45, %s2171_s29 }
 0xa08   : > { %v1584_v46 = vpop.permute.xlu1 %1583 }
 0xa09   : > { %2073 = vmatmul.msk.f32.vlgmr.msrb.gmra.mxu1 %vm1349_vm4, %v1584_v46 }
 0xa86   : > { %v1604_v48 = vpop.f32.mrf.mxu1 }
 0xa87   : > { %v1607_v49 = vadd.f32 %v1604_v48, %v1581_v47 }
 0xa89   : > { %2134 = vtanh.f32 %v1607_v49  ;;  %v2074_v51 = vmul.f32 -1.442695, %v1607_v49 }
 0xa8b   : > { %2136 = vpow2.f32 %v2074_v51 }
 0xa8f   : > { %v2135_v50 = vpop.eup %2134 }
 0xa90   : > { %1630 = vrot.lane.b32.xlu2 %v2135_v50, %s2172_s14 }
 0xa91   : > { %v2137_v52 = vpop.eup %2136 }
 0xa92   : > { %v1611_v53 = vadd.f32 1.0, %v2137_v52 }
 0xa94   : > { %2138 = vrcp.f32 %v1611_v53  ;;  %v1623_v58 = vand.u32 2147483648, %v1611_v53  ;;  %vm1617_vm2 = vweird.f32 %v1611_v53  ;;  %v1621_v59 = vand.u32 2147483647, %v1611_v53 }
 0xa96   : > { %v1624_v3 = vor.u32 1.1754944e-38, %v1623_v58  ;;  %vm1622_vm5 = vcmp.eq.f32.partialorder %v1621_v59, 8.507059e+37 }
 0xa9a   : > { %v2139_v54 = vpop.eup %2138 }
 0xa9b   : > { %v1613_v55 = vmul.f32 %v2139_v54, %v1611_v53  ;;  %vm1618_vm1 = vweird.f32 %v2139_v54 }
 0xa9c   : > { %vm1619_vm3 = vmor %vm1617_vm2, %vm1618_vm1 }
 0xa9d   : > { %v1614_v56 = vsub.f32 1.0, %v1613_v55 }
 0xa9f   : > { %v1615_v1 = vmul.f32 %v2139_v54, %v1614_v56 }
 0xaa1   : > { %v1616_v57 = vadd.f32 %v2139_v54, %v1615_v1 }
 0xaa3   : > { %v1620_v2 = vsel %vm1619_vm3, %v2139_v54, %v1616_v57 }
 0xaa4   : > { %v1625_v4 = vsel %vm1622_vm5, %v1624_v3, %v1620_v2  ;;  %v1817_v2 = vld [vmem:[%s2980_s13 + $0x18] sm:$0xff]  ;;  %v1816_v3 = vld [vmem:[%s2980_s13 + $0x10] sm:$0xff] }
 0xaa5   : > { %v1628_v0 = vmul.f32 %v1625_v4, %v1574_v36  ;;  %1835 = vmatpush.msra.mxu1 %v1817_v2 }
 0xaa7   : > { %1836 = vmatpush.msra.mxu1 %v1816_v3 }
 0xaea   : > { %v1631_v60 = vpop.permute.xlu2 %1630 }
 0xaeb   : > { %v1633_v6 = vmul.f32 %v1631_v60, %v1625_v4  ;;  %v1815_v60 = vld [vmem:[%s2980_s13 + $0x8] sm:$0xff] }
 0xaec   : > { %1837 = vmatpush.msra.mxu1 %v1815_v60 }
 0xaed   : > { %1635 = vrot.lane.b32.xlu0 %v1633_v6, %s2171_s29 }
 0xb5f   : > { %v1636_v61 = vpop.permute.xlu0 %1635 }
 0xb60   : > { %v2914_v13 = vadd.f32 %v1636_v61, %v1628_v0  ;;  %v1813_v0 = vld [vmem:[%s2979_s12 + $0x18] sm:$0xff]  ;;  %v1811_v61 = vld [vmem:[%s2979_s12 + $0x8] sm:$0xff] }
 0xb61   : > { %1860 = vmatpush.msrb.mxu2 %v1813_v0 }
 0xb62   : > { %2140 = vtanh.f32 %v2914_v13 }
 0xb63   : > { %2142 = vtanh.f32 %v1766_v62  ;;  %1861 = vmatpush.msrb.mxu2 %v1812_v10  ;;  %v2109_v62 = vld [vmem:[#allocation3] ss:$0 sm:$0xff] }
 0xb64   : > { %2144 = vpow2.f32 %v2081_v9 }
 0xb65   : > { %1862 = vmatpush.msrb.mxu2 %v1811_v61 }
 0xb68   : > { %v2141_v5 = vpop.eup %2140 }
 0xb69   : > { %1641 = vrot.lane.b32.xlu1 %v2141_v5, %s2172_s14  ;;  %v2143_v8 = vpop.eup %2142 }
 0xb6a   : > { %v2145_v12 = vpop.eup %2144 }
 0xb6b   : > { %v1772_v15 = vadd.f32 1.0, %v2145_v12 }
 0xb6d   : > { %2146 = vrcp.f32 %v1772_v15  ;;  %v1784_v37 = vand.u32 2147483648, %v1772_v15  ;;  %vm1778_vm7 = vweird.f32 %v1772_v15  ;;  %v1782_v14 = vand.u32 2147483647, %v1772_v15 }
 0xb6f   : > { %v1785_v19 = vor.u32 1.1754944e-38, %v1784_v37  ;;  %vm1783_vm9 = vcmp.eq.f32.partialorder %v1782_v14, 8.507059e+37 }
 0xb71   : > { %1795 = vrot.lane.b32.xlu1 %v2143_v8, %s2172_s14 }
 0xb73   : > { %v2147_v18 = vpop.eup %2146 }
 0xb74   : > { %v1774_v26 = vmul.f32 %v2147_v18, %v1772_v15  ;;  %vm1779_vm6 = vweird.f32 %v2147_v18 }
 0xb75   : > { %vm1780_vm8 = vmor %vm1778_vm7, %vm1779_vm6 }
 0xb76   : > { %v1775_v29 = vsub.f32 1.0, %v1774_v26 }
 0xb78   : > { %v1776_v31 = vmul.f32 %v2147_v18, %v1775_v29 }
 0xb7a   : > { %v1777_v63 = vadd.f32 %v2147_v18, %v1776_v31 }
 0xb7c   : > { %v1781_v39 = vsel %vm1780_vm8, %v2147_v18, %v1777_v63 }
 0xb7d   : > { %v1786_v17 = vsel %vm1783_vm9, %v1785_v19, %v1781_v39 }
 0xbdb   : > { %v1642_v33 = vpop.permute.xlu1 %1641 }
 0xbdc   : > { %v1644_v35 = vmul.f32 %v1642_v33, %v1625_v4  ;;  %v1814_v4 = vld [vmem:[%s2980_s13] sm:$0xff] }
 0xbdd   : > { %1838 = vmatpush.msra.mxu1 %v1814_v4 }
 0xbde   : > { %1647 = vrot.lane.b32.xlu2 %v1644_v35, %s2171_s29 }
 0xbe3   : > { %v1796_v43 = vpop.permute.xlu1 %1795 }
 0xbe4   : > { %v1798_v30 = vmul.f32 %v1796_v43, %v1786_v17 }
 0xbe6   : > { %1800 = vrot.lane.b32.xlu1 %v1798_v30, %s2171_s29 }
 0xc38   : > { %v1648_v41 = vpop.permute.xlu2 %1647 }
 0xc39   : > { %2075 = vmatmul.msk.f32.vlgmr.msra.gmra.mxu2 %vm1349_vm4, %v1648_v41 }
 0xc58   : > { %v1801_v52 = vpop.permute.xlu1 %1800 }
 0xcbc   : > { %v1668_v20 = vpop.f32.mrf.mxu2 }
 0xcbd   : > { %v1671_v23 = vadd.f32 %v1668_v20, %v1645_v22 }
 0xcbf   : > { %2148 = vtanh.f32 %v1671_v23  ;;  %v2076_v25 = vmul.f32 -1.442695, %v1671_v23 }
 0xcc1   : > { %2150 = vpow2.f32 %v2076_v25 }
 0xcc5   : > { %v2149_v21 = vpop.eup %2148 }
 0xcc6   : > { %1694 = vrot.lane.b32.xlu0 %v2149_v21, %s2172_s14 }
 0xcc7   : > { %v2151_v42 = vpop.eup %2150 }
 0xcc8   : > { %v1675_v44 = vadd.f32 1.0, %v2151_v42 }
 0xcca   : > { %2152 = vrcp.f32 %v1675_v44  ;;  %v1687_v38 = vand.u32 2147483648, %v1675_v44  ;;  %vm1681_vm11 = vweird.f32 %v1675_v44  ;;  %v1685_v40 = vand.u32 2147483647, %v1675_v44 }
 0xccc   : > { %v1688_v46 = vor.u32 1.1754944e-38, %v1687_v38  ;;  %vm1686_vm13 = vcmp.eq.f32.partialorder %v1685_v40, 8.507059e+37 }
 0xcce   : > { %1790 = vrot.lane.b32.xlu0 %v2080_v24, %s2171_s29 }
 0xcd0   : > { %v2153_v27 = vpop.eup %2152 }
 0xcd1   : > { %v1677_v28 = vmul.f32 %v2153_v27, %v1675_v44  ;;  %vm1682_vm10 = vweird.f32 %v2153_v27 }
 0xcd2   : > { %vm1683_vm12 = vmor %vm1681_vm11, %vm1682_vm10 }
 0xcd3   : > { %v1678_v32 = vsub.f32 1.0, %v1677_v28 }
 0xcd5   : > { %v1679_v34 = vmul.f32 %v2153_v27, %v1678_v32 }
 0xcd7   : > { %v1680_v36 = vadd.f32 %v2153_v27, %v1679_v34 }
 0xcd9   : > { %v1684_v45 = vsel %vm1683_vm12, %v2153_v27, %v1680_v36 }
 0xcda   : > { %v1689_v48 = vsel %vm1686_vm13, %v1688_v46, %v1684_v45 }
 0xcdb   : > { %v1692_v55 = vmul.f32 %v1689_v48, %v2914_v13  ;;  %v1810_v13 = vld [vmem:[%s2979_s12] sm:$0xff] }
 0xcdc   : > { %1863 = vmatpush.msrb.mxu2 %v1810_v13 }
 0xd38   : > { %v1695_v47 = vpop.permute.xlu0 %1694 }
 0xd39   : > { %v1697_v49 = vmul.f32 %v1695_v47, %v1689_v48 }
 0xd3b   : > { %1699 = vrot.lane.b32.xlu2 %v1697_v49, %s2171_s29 }
 0xd40   : > { %v1791_v50 = vpop.permute.xlu0 %1790 }
 0xd41   : > { %v1793_v51 = vmul.f32 %v1791_v50, %v1786_v17 }
 0xd43   : > { %v1803_v53 = vadd.f32 %v1801_v52, %v1793_v51 }
 0xd45   : > { %2154 = vtanh.f32 %v1803_v53 }
 0xd4b   : > { %v2155_v54 = vpop.eup %2154 }
 0xd4c   : > { %1806 = vrot.lane.b32.xlu0 %v2155_v54, %s2172_s14 }
 0xd95   : > { %v1700_v56 = vpop.permute.xlu2 %1699 }
 0xd96   : > { %v1702_v1 = vadd.f32 %v1700_v56, %v1692_v55 }
 0xd98   : > { %2156 = vtanh.f32 %v1702_v1 }
 0xd9e   : > { %v2157_v57 = vpop.eup %2156 }
 0xd9f   : > { %1705 = vrot.lane.b32.xlu2 %v2157_v57, %s2172_s14 }
 0xdbe   : > { %v1807_v58 = vpop.permute.xlu0 %1806 }
 0xdbf   : > { %v1809_v59 = vmul.f32 %v1807_v58, %v1786_v17 }
 0xdc1   : > { %1819 = vrot.lane.b32.xlu2 %v1809_v59, %s2171_s29 }
 0xdf9   : > { %v1706_v6 = vpop.permute.xlu2 %1705 }
 0xdfa   : > { %v1708_v7 = vmul.f32 %v1706_v6, %v1689_v48 }
 0xdfc   : > { %1844 = vrot.lane.b32.xlu1 %v1708_v7, %s2171_s29  ;;  %s1994_s29 = sshll.u32 %s2991_s27, 1 }
 0xdfd   : > { %s608_s1 = scalar_lea.vmem %s2984_s17, %s1994_s29 }
 0xe1b   : > { %v1820_v11 = vpop.permute.xlu2 %1819 }
 0xe1c   : > { %2082 = vmatmul.msk.f32.vlgmr.msra.gmra.mxu1 %vm1349_vm4, %v1820_v11 }
 0xe6e   : > { %v1845_v16 = vpop.permute.xlu1 %1844 }
 0xe6f   : > { %2083 = vmatmul.msk.f32.vlgmr.msrb.gmra.mxu2 %vm1349_vm4, %v1845_v16 }
 0xe99   : > { %v1840_v5 = vpop.f32.mrf.mxu1 }
 0xef2   : > { %v1865_v8 = vpop.f32.mrf.mxu2 }
 0xef3   : > { %v1866_v9 = vadd.f32 %v1865_v8, %v1840_v5 }
 0xef5   : > { %v1872_v12 = vadd.f32 %v2109_v62, %v1866_v9 }
 0xef7   : > { %v2084_v15 = vmul.f32 -1.442695, %v1872_v12 }
 0xef9   : > { %2158 = vpow2.f32 %v2084_v15 }
 0xeff   : > { %v2159_v18 = vpop.eup %2158 }
 0xf00   : > { %v1876_v26 = vadd.f32 1.0, %v2159_v18 }
 0xf02   : > { %2160 = vrcp.f32 %v1876_v26  ;;  %v1888_v35 = vand.u32 2147483648, %v1876_v26  ;;  %v1886_v37 = vand.u32 2147483647, %v1876_v26  ;;  %vm1882_vm4 = vweird.f32 %v1876_v26 }
 0xf04   : > { %v1889_v39 = vor.u32 1.1754944e-38, %v1888_v35  ;;  %vm1887_vm1 = vcmp.eq.f32.partialorder %v1886_v37, 8.507059e+37 }
 0xf08   : > { %v2161_v29 = vpop.eup %2160 }
 0xf09   : > { %v1878_v31 = vmul.f32 %v2161_v29, %v1876_v26  ;;  %vm1883_vm14 = vweird.f32 %v2161_v29 }
 0xf0a   : > { %vm1884_vm15 = vmor %vm1882_vm4, %vm1883_vm14 }
 0xf0b   : > { %v1879_v33 = vsub.f32 1.0, %v1878_v31 }
 0xf0d   : > { %v1880_v63 = vmul.f32 %v2161_v29, %v1879_v33 }
 0xf0f   : > { %v1881_v14 = vadd.f32 %v2161_v29, %v1880_v63 }
 0xf11   : > { %v1885_v19 = vsel %vm1884_vm15, %v2161_v29, %v1881_v14 }
 0xf12   : > { %v1890_v17 = vsel %vm1887_vm1, %v1889_v39, %v1885_v19 }
 0xf13   : > { %1893 = vst.msk [vmem:[%s608_s1] sm:$0x3] %vm1892_vm0, %v1890_v17 }
 0xf14 PF: > { %s29_s26 = sadd.s32 1, %s2168_s26  }
 0xf15   : > { %p26_p4 = scmp.ge.s32.totalorder %s29_s26, 4  }
 0xf17   :  { %28 = sbr.rel (!%p26_p4) target bundleno = 3 (0x3), region = 141 }

</bundles_post_ra>
